<compile_context>
chip_gen: v7x
topology: tpu7x:2x2x1
jax: 0.10.0
libtpu: 0.0.40
codegen_flags: <defaults>
</compile_context>

<pallas_src>
import functools

import numpy as np

import jax
import jax.numpy as jnp
from jax.experimental import pallas as pl
from jax.experimental.pallas import tpu as pltpu


# ------------------------------- Pallas kernel ------------------------------ #

def _hpm_block_kernel(x_ref, m_ref, w1_ref, b1_ref, w2_ref, b2_ref,
                      w3_ref, b3_ref, w4_ref, b4_ref, o_ref, *, W):
    """Fused HPM block for one image (channel-major, spatial flattened).

    x_ref : (1, Cin, HW)    input image
    m_ref : (9, 1, HW)      {0,1} border mask per 3x3 tap
    wK_ref: (9, Cout, Cin)  3x3 weights, tap-major, BN scale pre-folded
    bK_ref: (Cout, 1)       folded conv+BN bias
    w4_ref: (Ct, Cin)       1x1 shortcut weights, BN scale pre-folded
    b4_ref: (Ct, 1)         folded shortcut bias
    o_ref : (1, Ct, HW)     out = concat([x1, x2, x3], C) + shortcut
    """
    x = x_ref[0]                       # (Cin, HW) f32
    hw = x.shape[1]
    offs = [dy * W + dx for dy in (-1, 0, 1) for dx in (-1, 0, 1)]

    def conv3x3_bn_relu(inp, w_ref_, b_ref_):
        cout = w_ref_.shape[1]
        acc = jnp.zeros((cout, hw), jnp.float32)
        for t, off in enumerate(offs):
            if off == 0:
                shifted = inp                          # center tap, no shift
            else:
                rolled = pltpu.roll(inp, shift=(-off) % hw, axis=1)  # XLU
                shifted = rolled * m_ref[t]            # zero out wrapped halo
            acc = acc + jnp.dot(w_ref_[t], shifted,    # (Cout,Cin)@(Cin,HW)
                                preferred_element_type=jnp.float32)
        return jnp.maximum(acc + b_ref_[...], 0.0)     # folded BN bias + ReLU

    x1 = conv3x3_bn_relu(x, w1_ref, b1_ref)            # (C1, HW)
    x2 = conv3x3_bn_relu(x1, w2_ref, b2_ref)           # (C2, HW)
    x3 = conv3x3_bn_relu(x2, w3_ref, b3_ref)           # (C2, HW)

    sc = jnp.dot(w4_ref[...], x, preferred_element_type=jnp.float32)
    sc = sc + b4_ref[...]                              # (Ct, HW) shortcut

    c1 = x1.shape[0]
    c2 = x2.shape[0]
    # concat + residual add realized as channel-slice stores (lane-dense)
    o_ref[0, :c1, :] = x1 + sc[:c1, :]
    o_ref[0, c1:c1 + c2, :] = x2 + sc[c1:c1 + c2, :]
    o_ref[0, c1 + c2:c1 + 2 * c2, :] = x3 + sc[c1 + c2:c1 + 2 * c2, :]


# ------------------------------ kernel wrapper ------------------------------ #

def _build_tap_masks(H, W):
    """(9, 1, H*W) {0,1} masks marking in-bounds pixels for each 3x3 tap."""
    HW = H * W
    ys, xs = np.divmod(np.arange(HW, dtype=np.int64), W)
    rows = []
    for dy in (-1, 0, 1):
        for dx in (-1, 0, 1):
            valid = ((ys + dy >= 0) & (ys + dy < H) &
                     (xs + dx >= 0) & (xs + dx < W))
            rows.append(valid.astype(np.float32))
    return jnp.asarray(np.stack(rows, axis=0)[:, None, :])


def _fold_conv3x3(w_hwio, scale):
    """(3,3,Cin,Cout) HWIO weights * BN scale -> (9, Cout, Cin), tap-major."""
    kh, kw, cin, cout = w_hwio.shape
    w = (w_hwio * scale).reshape(kh * kw, cin, cout)
    return jnp.transpose(w, (0, 2, 1))


def hpm_block_forward(x_nchw, p):
    N, Cin, H, W = x_nchw.shape
    HW = H * W
    C1 = p["w1"].shape[-1]
    C2 = p["w2"].shape[-1]
    Ct = p["w4"].shape[-1]
    assert Ct == C1 + 2 * C2, "residual add requires ch_out == 2 * ch_in"

    x = x_nchw.reshape(N, Cin, HW).astype(jnp.float32)   # NCHW, free reshape
    masks = _build_tap_masks(H, W)

    w1k = _fold_conv3x3(p["w1"], p["s1"]); b1k = p["b1"].reshape(C1, 1)
    w2k = _fold_conv3x3(p["w2"], p["s2"]); b2k = p["b2"].reshape(C2, 1)
    w3k = _fold_conv3x3(p["w3"], p["s3"]); b3k = p["b3"].reshape(C2, 1)
    w4k = jnp.transpose(p["w4"] * p["s4"])                # (Ct, Cin)
    b4k = p["b4"].reshape(Ct, 1)

    kernel = functools.partial(_hpm_block_kernel, W=W)
    out = pl.pallas_call(
        kernel,
        out_shape=jax.ShapeDtypeStruct((N, Ct, HW), jnp.float32),
        grid=(N,),
        in_specs=[
            pl.BlockSpec((1, Cin, HW), lambda n: (n, 0, 0)),
            pl.BlockSpec((9, 1, HW), lambda n: (0, 0, 0)),
            pl.BlockSpec((9, C1, Cin), lambda n: (0, 0, 0)),
            pl.BlockSpec((C1, 1), lambda n: (0, 0)),
            pl.BlockSpec((9, C2, C1), lambda n: (0, 0, 0)),
            pl.BlockSpec((C2, 1), lambda n: (0, 0)),
            pl.BlockSpec((9, C2, C2), lambda n: (0, 0, 0)),
            pl.BlockSpec((C2, 1), lambda n: (0, 0)),
            pl.BlockSpec((Ct, Cin), lambda n: (0, 0)),
            pl.BlockSpec((Ct, 1), lambda n: (0, 0)),
        ],
        out_specs=pl.BlockSpec((1, Ct, HW), lambda n: (n, 0, 0)),
        compiler_params=pltpu.CompilerParams(
            dimension_semantics=("parallel",)),
    )(x, masks, w1k, b1k, w2k, b2k, w3k, b3k, w4k, b4k)

    return out.reshape(N, Ct, H, W)                       # already NCHW


# -------------------------- deterministic parameters ------------------------ #

def init_params(key, ch_in, ch_out, eps=1e-5):
    c_half = ch_in // 2
    layer_defs = [  # (kh, kw, cin, cout)
        (3, 3, ch_in, ch_in),
        (3, 3, ch_in, c_half),
        (3, 3, c_half, c_half),
        (1, 1, ch_in, ch_out),
    ]
    params = {}
    keys = jax.random.split(key, 6 * len(layer_defs))
    for i, (kh, kw, cin, cout) in enumerate(layer_defs):
        kw_, kcb, kg, kb, km, kv = keys[6 * i:6 * (i + 1)]
        w = 0.1 * jax.random.normal(kw_, (kh, kw, cin, cout), jnp.float32)
        conv_b = 0.1 * jax.random.normal(kcb, (cout,), jnp.float32)
        gamma = 1.0 + 0.1 * jax.random.normal(kg, (cout,), jnp.float32)
        beta = 0.1 * jax.random.normal(kb, (cout,), jnp.float32)
        rmean = 0.1 * jax.random.normal(km, (cout,), jnp.float32)
        rvar = jnp.abs(1.0 + 0.1 * jax.random.normal(kv, (cout,), jnp.float32))
        s = gamma / jnp.sqrt(rvar + eps)
        b = (conv_b - rmean) * s + beta
        idx = i + 1
        params[f"w{idx}"] = w if kh == 3 else w.reshape(cin, cout)
        params[f"s{idx}"] = s
        params[f"b{idx}"] = b
    return params


# ------------------------------ pure-JAX reference -------------------------- #

def ref_forward(x_nchw, p):
    x = jnp.transpose(x_nchw, (0, 2, 3, 1))

    def conv(inp, w, pad):
        return jax.lax.conv_general_dilated(
            inp, w, (1, 1), pad, dimension_numbers=("NHWC", "HWIO", "NHWC"))

    x1 = jnp.maximum(conv(x, p["w1"], "SAME") * p["s1"] + p["b1"], 0.0)
    x2 = jnp.maximum(conv(x1, p["w2"], "SAME") * p["s2"] + p["b2"], 0.0)
    x3 = jnp.maximum(conv(x2, p["w3"], "SAME") * p["s3"] + p["b3"], 0.0)
    cin, cout = p["w4"].shape
    sc = conv(x, p["w4"].reshape(1, 1, cin, cout), "VALID") * p["s4"] + p["b4"]
    out = jnp.concatenate([x1, x2, x3], axis=-1) + sc
    return jnp.transpose(out, (0, 3, 1, 2))


# ----------------------------------- main ----------------------------------- #

if __name__ == "__main__":
    N, CH_IN, H, W = 2, 4, 16, 16
    # cat([x1, x2, x3]) has 2*ch_in channels, so ch_out must equal 2*ch_in
    # for the residual add in the original module to be shape-consistent.
    CH_OUT = 2 * CH_IN

    root = jax.random.PRNGKey(0)
    k_params, k_x = jax.random.split(root)
    params = init_params(k_params, CH_IN, CH_OUT)
    x = jax.random.normal(k_x, (N, CH_IN, H, W), jnp.float32)

    fwd = jax.jit(hpm_block_forward)
    out = jax.block_until_ready(fwd(x, params))
    ref = jax.block_until_ready(ref_forward(x, params))

    assert out.shape == (N, CH_OUT, H, W), out.shape
    max_err = float(jnp.max(jnp.abs(out - ref)))
    assert max_err < 1e-4, f"mismatch vs reference: max abs err {max_err}"
    print("KERNEL_OK")
</pallas_src>

<mosaic_0001>
module attributes {stable_mosaic.version = 11 : i64} {
  func.func @_hpm_block_kernel(%arg0: i32, %arg1: memref<1x4x256xf32, #tpu.memory_space<vmem>>, %arg2: memref<9x1x256xf32, #tpu.memory_space<vmem>>, %arg3: memref<9x4x4xf32, #tpu.memory_space<vmem>>, %arg4: memref<4x1xf32, #tpu.memory_space<vmem>>, %arg5: memref<9x2x4xf32, #tpu.memory_space<vmem>>, %arg6: memref<2x1xf32, #tpu.memory_space<vmem>>, %arg7: memref<9x2x2xf32, #tpu.memory_space<vmem>>, %arg8: memref<2x1xf32, #tpu.memory_space<vmem>>, %arg9: memref<8x4xf32, #tpu.memory_space<vmem>>, %arg10: memref<8x1xf32, #tpu.memory_space<vmem>>, %arg11: memref<1x8x256xf32, #tpu.memory_space<vmem>>) attributes {dimension_semantics = [#tpu.dimension_semantics<parallel>], iteration_bounds = array<i64: 2>, scalar_prefetch = 0 : i64, scratch_operands = 0 : i64, tpu.core_type = #tpu.core_type<tc>, window_params = [{transform_indices = @transform_0, window_bounds = array<i64: 1, 4, 256>}, {pipeline_mode = #tpu.pipeline_mode<synchronous>, transform_indices = @transform_1, window_bounds = array<i64: 9, 1, 256>}, {pipeline_mode = #tpu.pipeline_mode<synchronous>, transform_indices = @transform_2, window_bounds = array<i64: 9, 4, 4>}, {pipeline_mode = #tpu.pipeline_mode<synchronous>, transform_indices = @transform_3, window_bounds = array<i64: 4, 1>}, {pipeline_mode = #tpu.pipeline_mode<synchronous>, transform_indices = @transform_4, window_bounds = array<i64: 9, 2, 4>}, {pipeline_mode = #tpu.pipeline_mode<synchronous>, transform_indices = @transform_5, window_bounds = array<i64: 2, 1>}, {pipeline_mode = #tpu.pipeline_mode<synchronous>, transform_indices = @transform_6, window_bounds = array<i64: 9, 2, 2>}, {pipeline_mode = #tpu.pipeline_mode<synchronous>, transform_indices = @transform_7, window_bounds = array<i64: 2, 1>}, {pipeline_mode = #tpu.pipeline_mode<synchronous>, transform_indices = @transform_8, window_bounds = array<i64: 8, 4>}, {pipeline_mode = #tpu.pipeline_mode<synchronous>, transform_indices = @transform_9, window_bounds = array<i64: 8, 1>}, {transform_indices = @transform_10, window_bounds = array<i64: 1, 8, 256>}]} {
    %c0 = arith.constant 0 : index
    %c0_0 = arith.constant 0 : index
    %c0_1 = arith.constant 0 : index
    %0 = vector.load %arg1[%c0, %c0_0, %c0_1] : memref<1x4x256xf32, #tpu.memory_space<vmem>>, vector<1x4x256xf32>
    %1 = vector.shape_cast %0 : vector<1x4x256xf32> to vector<4x256xf32>
    %cst = arith.constant 0.000000e+00 : f32
    %2 = vector.broadcast %cst : f32 to vector<4x256xf32>
    %c17_i32 = arith.constant 17 : i32
    %3 = tpu.dynamic_rotate %1 by %c17_i32 dim 1 : vector<4x256xf32>, i32 -> vector<4x256xf32>
    %c0_2 = arith.constant 0 : index
    %c0_3 = arith.constant 0 : index
    %c0_4 = arith.constant 0 : index
    %4 = vector.load %arg2[%c0_2, %c0_3, %c0_4] : memref<9x1x256xf32, #tpu.memory_space<vmem>>, vector<1x1x256xf32>
    %5 = vector.shape_cast %4 : vector<1x1x256xf32> to vector<1x256xf32>
    %6 = vector.broadcast %5 : vector<1x256xf32> to vector<4x256xf32>
    %7 = arith.mulf %3, %6 : vector<4x256xf32>
    %c0_5 = arith.constant 0 : index
    %c0_6 = arith.constant 0 : index
    %c0_7 = arith.constant 0 : index
    %8 = vector.load %arg3[%c0_5, %c0_6, %c0_7] : memref<9x4x4xf32, #tpu.memory_space<vmem>>, vector<1x4x4xf32>
    %9 = vector.shape_cast %8 : vector<1x4x4xf32> to vector<4x4xf32>
    %cst_8 = arith.constant dense<0.000000e+00> : vector<4x256xf32>
    %10 = tpu.matmul %9, %7, %cst_8 {dimension_numbers = #tpu.dot_dimension_numbers<[1], [0], [0], [1], [0, 0, 1, 1], [], []>} : vector<4x4xf32>, vector<4x256xf32>, vector<4x256xf32> -> vector<4x256xf32>
    %11 = arith.addf %2, %10 : vector<4x256xf32>
    %c16_i32 = arith.constant 16 : i32
    %12 = tpu.dynamic_rotate %1 by %c16_i32 dim 1 : vector<4x256xf32>, i32 -> vector<4x256xf32>
    %c1 = arith.constant 1 : index
    %c0_9 = arith.constant 0 : index
    %c0_10 = arith.constant 0 : index
    %13 = vector.load %arg2[%c1, %c0_9, %c0_10] : memref<9x1x256xf32, #tpu.memory_space<vmem>>, vector<1x1x256xf32>
    %14 = vector.shape_cast %13 : vector<1x1x256xf32> to vector<1x256xf32>
    %15 = vector.broadcast %14 : vector<1x256xf32> to vector<4x256xf32>
    %16 = arith.mulf %12, %15 : vector<4x256xf32>
    %c1_11 = arith.constant 1 : index
    %c0_12 = arith.constant 0 : index
    %c0_13 = arith.constant 0 : index
    %17 = vector.load %arg3[%c1_11, %c0_12, %c0_13] : memref<9x4x4xf32, #tpu.memory_space<vmem>>, vector<1x4x4xf32>
    %18 = vector.shape_cast %17 : vector<1x4x4xf32> to vector<4x4xf32>
    %cst_14 = arith.constant dense<0.000000e+00> : vector<4x256xf32>
    %19 = tpu.matmul %18, %16, %cst_14 {dimension_numbers = #tpu.dot_dimension_numbers<[1], [0], [0], [1], [0, 0, 1, 1], [], []>} : vector<4x4xf32>, vector<4x256xf32>, vector<4x256xf32> -> vector<4x256xf32>
    %20 = arith.addf %11, %19 : vector<4x256xf32>
    %c15_i32 = arith.constant 15 : i32
    %21 = tpu.dynamic_rotate %1 by %c15_i32 dim 1 : vector<4x256xf32>, i32 -> vector<4x256xf32>
    %c2 = arith.constant 2 : index
    %c0_15 = arith.constant 0 : index
    %c0_16 = arith.constant 0 : index
    %22 = vector.load %arg2[%c2, %c0_15, %c0_16] : memref<9x1x256xf32, #tpu.memory_space<vmem>>, vector<1x1x256xf32>
    %23 = vector.shape_cast %22 : vector<1x1x256xf32> to vector<1x256xf32>
    %24 = vector.broadcast %23 : vector<1x256xf32> to vector<4x256xf32>
    %25 = arith.mulf %21, %24 : vector<4x256xf32>
    %c2_17 = arith.constant 2 : index
    %c0_18 = arith.constant 0 : index
    %c0_19 = arith.constant 0 : index
    %26 = vector.load %arg3[%c2_17, %c0_18, %c0_19] : memref<9x4x4xf32, #tpu.memory_space<vmem>>, vector<1x4x4xf32>
    %27 = vector.shape_cast %26 : vector<1x4x4xf32> to vector<4x4xf32>
    %cst_20 = arith.constant dense<0.000000e+00> : vector<4x256xf32>
    %28 = tpu.matmul %27, %25, %cst_20 {dimension_numbers = #tpu.dot_dimension_numbers<[1], [0], [0], [1], [0, 0, 1, 1], [], []>} : vector<4x4xf32>, vector<4x256xf32>, vector<4x256xf32> -> vector<4x256xf32>
    %29 = arith.addf %20, %28 : vector<4x256xf32>
    %c1_i32 = arith.constant 1 : i32
    %30 = tpu.dynamic_rotate %1 by %c1_i32 dim 1 : vector<4x256xf32>, i32 -> vector<4x256xf32>
    %c3 = arith.constant 3 : index
    %c0_21 = arith.constant 0 : index
    %c0_22 = arith.constant 0 : index
    %31 = vector.load %arg2[%c3, %c0_21, %c0_22] : memref<9x1x256xf32, #tpu.memory_space<vmem>>, vector<1x1x256xf32>
    %32 = vector.shape_cast %31 : vector<1x1x256xf32> to vector<1x256xf32>
    %33 = vector.broadcast %32 : vector<1x256xf32> to vector<4x256xf32>
    %34 = arith.mulf %30, %33 : vector<4x256xf32>
    %c3_23 = arith.constant 3 : index
    %c0_24 = arith.constant 0 : index
    %c0_25 = arith.constant 0 : index
    %35 = vector.load %arg3[%c3_23, %c0_24, %c0_25] : memref<9x4x4xf32, #tpu.memory_space<vmem>>, vector<1x4x4xf32>
    %36 = vector.shape_cast %35 : vector<1x4x4xf32> to vector<4x4xf32>
    %cst_26 = arith.constant dense<0.000000e+00> : vector<4x256xf32>
    %37 = tpu.matmul %36, %34, %cst_26 {dimension_numbers = #tpu.dot_dimension_numbers<[1], [0], [0], [1], [0, 0, 1, 1], [], []>} : vector<4x4xf32>, vector<4x256xf32>, vector<4x256xf32> -> vector<4x256xf32>
    %38 = arith.addf %29, %37 : vector<4x256xf32>
    %c4 = arith.constant 4 : index
    %c0_27 = arith.constant 0 : index
    %c0_28 = arith.constant 0 : index
    %39 = vector.load %arg3[%c4, %c0_27, %c0_28] : memref<9x4x4xf32, #tpu.memory_space<vmem>>, vector<1x4x4xf32>
    %40 = vector.shape_cast %39 : vector<1x4x4xf32> to vector<4x4xf32>
    %cst_29 = arith.constant dense<0.000000e+00> : vector<4x256xf32>
    %41 = tpu.matmul %40, %1, %cst_29 {dimension_numbers = #tpu.dot_dimension_numbers<[1], [0], [0], [1], [0, 0, 1, 1], [], []>} : vector<4x4xf32>, vector<4x256xf32>, vector<4x256xf32> -> vector<4x256xf32>
    %42 = arith.addf %38, %41 : vector<4x256xf32>
    %c255_i32 = arith.constant 255 : i32
    %43 = tpu.dynamic_rotate %1 by %c255_i32 dim 1 : vector<4x256xf32>, i32 -> vector<4x256xf32>
    %c5 = arith.constant 5 : index
    %c0_30 = arith.constant 0 : index
    %c0_31 = arith.constant 0 : index
    %44 = vector.load %arg2[%c5, %c0_30, %c0_31] : memref<9x1x256xf32, #tpu.memory_space<vmem>>, vector<1x1x256xf32>
    %45 = vector.shape_cast %44 : vector<1x1x256xf32> to vector<1x256xf32>
    %46 = vector.broadcast %45 : vector<1x256xf32> to vector<4x256xf32>
    %47 = arith.mulf %43, %46 : vector<4x256xf32>
    %c5_32 = arith.constant 5 : index
    %c0_33 = arith.constant 0 : index
    %c0_34 = arith.constant 0 : index
    %48 = vector.load %arg3[%c5_32, %c0_33, %c0_34] : memref<9x4x4xf32, #tpu.memory_space<vmem>>, vector<1x4x4xf32>
    %49 = vector.shape_cast %48 : vector<1x4x4xf32> to vector<4x4xf32>
    %cst_35 = arith.constant dense<0.000000e+00> : vector<4x256xf32>
    %50 = tpu.matmul %49, %47, %cst_35 {dimension_numbers = #tpu.dot_dimension_numbers<[1], [0], [0], [1], [0, 0, 1, 1], [], []>} : vector<4x4xf32>, vector<4x256xf32>, vector<4x256xf32> -> vector<4x256xf32>
    %51 = arith.addf %42, %50 : vector<4x256xf32>
    %c241_i32 = arith.constant 241 : i32
    %52 = tpu.dynamic_rotate %1 by %c241_i32 dim 1 : vector<4x256xf32>, i32 -> vector<4x256xf32>
    %c6 = arith.constant 6 : index
    %c0_36 = arith.constant 0 : index
    %c0_37 = arith.constant 0 : index
    %53 = vector.load %arg2[%c6, %c0_36, %c0_37] : memref<9x1x256xf32, #tpu.memory_space<vmem>>, vector<1x1x256xf32>
    %54 = vector.shape_cast %53 : vector<1x1x256xf32> to vector<1x256xf32>
    %55 = vector.broadcast %54 : vector<1x256xf32> to vector<4x256xf32>
    %56 = arith.mulf %52, %55 : vector<4x256xf32>
    %c6_38 = arith.constant 6 : index
    %c0_39 = arith.constant 0 : index
    %c0_40 = arith.constant 0 : index
    %57 = vector.load %arg3[%c6_38, %c0_39, %c0_40] : memref<9x4x4xf32, #tpu.memory_space<vmem>>, vector<1x4x4xf32>
    %58 = vector.shape_cast %57 : vector<1x4x4xf32> to vector<4x4xf32>
    %cst_41 = arith.constant dense<0.000000e+00> : vector<4x256xf32>
    %59 = tpu.matmul %58, %56, %cst_41 {dimension_numbers = #tpu.dot_dimension_numbers<[1], [0], [0], [1], [0, 0, 1, 1], [], []>} : vector<4x4xf32>, vector<4x256xf32>, vector<4x256xf32> -> vector<4x256xf32>
    %60 = arith.addf %51, %59 : vector<4x256xf32>
    %c240_i32 = arith.constant 240 : i32
    %61 = tpu.dynamic_rotate %1 by %c240_i32 dim 1 : vector<4x256xf32>, i32 -> vector<4x256xf32>
    %c7 = arith.constant 7 : index
    %c0_42 = arith.constant 0 : index
    %c0_43 = arith.constant 0 : index
    %62 = vector.load %arg2[%c7, %c0_42, %c0_43] : memref<9x1x256xf32, #tpu.memory_space<vmem>>, vector<1x1x256xf32>
    %63 = vector.shape_cast %62 : vector<1x1x256xf32> to vector<1x256xf32>
    %64 = vector.broadcast %63 : vector<1x256xf32> to vector<4x256xf32>
    %65 = arith.mulf %61, %64 : vector<4x256xf32>
    %c7_44 = arith.constant 7 : index
    %c0_45 = arith.constant 0 : index
    %c0_46 = arith.constant 0 : index
    %66 = vector.load %arg3[%c7_44, %c0_45, %c0_46] : memref<9x4x4xf32, #tpu.memory_space<vmem>>, vector<1x4x4xf32>
    %67 = vector.shape_cast %66 : vector<1x4x4xf32> to vector<4x4xf32>
    %cst_47 = arith.constant dense<0.000000e+00> : vector<4x256xf32>
    %68 = tpu.matmul %67, %65, %cst_47 {dimension_numbers = #tpu.dot_dimension_numbers<[1], [0], [0], [1], [0, 0, 1, 1], [], []>} : vector<4x4xf32>, vector<4x256xf32>, vector<4x256xf32> -> vector<4x256xf32>
    %69 = arith.addf %60, %68 : vector<4x256xf32>
    %c239_i32 = arith.constant 239 : i32
    %70 = tpu.dynamic_rotate %1 by %c239_i32 dim 1 : vector<4x256xf32>, i32 -> vector<4x256xf32>
    %c8 = arith.constant 8 : index
    %c0_48 = arith.constant 0 : index
    %c0_49 = arith.constant 0 : index
    %71 = vector.load %arg2[%c8, %c0_48, %c0_49] : memref<9x1x256xf32, #tpu.memory_space<vmem>>, vector<1x1x256xf32>
    %72 = vector.shape_cast %71 : vector<1x1x256xf32> to vector<1x256xf32>
    %73 = vector.broadcast %72 : vector<1x256xf32> to vector<4x256xf32>
    %74 = arith.mulf %70, %73 : vector<4x256xf32>
    %c8_50 = arith.constant 8 : index
    %c0_51 = arith.constant 0 : index
    %c0_52 = arith.constant 0 : index
    %75 = vector.load %arg3[%c8_50, %c0_51, %c0_52] : memref<9x4x4xf32, #tpu.memory_space<vmem>>, vector<1x4x4xf32>
    %76 = vector.shape_cast %75 : vector<1x4x4xf32> to vector<4x4xf32>
    %cst_53 = arith.constant dense<0.000000e+00> : vector<4x256xf32>
    %77 = tpu.matmul %76, %74, %cst_53 {dimension_numbers = #tpu.dot_dimension_numbers<[1], [0], [0], [1], [0, 0, 1, 1], [], []>} : vector<4x4xf32>, vector<4x256xf32>, vector<4x256xf32> -> vector<4x256xf32>
    %78 = arith.addf %69, %77 : vector<4x256xf32>
    %c0_54 = arith.constant 0 : index
    %c0_55 = arith.constant 0 : index
    %79 = vector.load %arg4[%c0_54, %c0_55] : memref<4x1xf32, #tpu.memory_space<vmem>>, vector<4x1xf32>
    %80 = vector.broadcast %79 : vector<4x1xf32> to vector<4x256xf32>
    %81 = arith.addf %78, %80 : vector<4x256xf32>
    %cst_56 = arith.constant 0.000000e+00 : f32
    %82 = vector.broadcast %cst_56 : f32 to vector<4x256xf32>
    %83 = arith.maximumf %81, %82 : vector<4x256xf32>
    %cst_57 = arith.constant 0.000000e+00 : f32
    %84 = vector.broadcast %cst_57 : f32 to vector<2x256xf32>
    %c17_i32_58 = arith.constant 17 : i32
    %85 = tpu.dynamic_rotate %83 by %c17_i32_58 dim 1 : vector<4x256xf32>, i32 -> vector<4x256xf32>
    %c0_59 = arith.constant 0 : index
    %c0_60 = arith.constant 0 : index
    %c0_61 = arith.constant 0 : index
    %86 = vector.load %arg2[%c0_59, %c0_60, %c0_61] : memref<9x1x256xf32, #tpu.memory_space<vmem>>, vector<1x1x256xf32>
    %87 = vector.shape_cast %86 : vector<1x1x256xf32> to vector<1x256xf32>
    %88 = vector.broadcast %87 : vector<1x256xf32> to vector<4x256xf32>
    %89 = arith.mulf %85, %88 : vector<4x256xf32>
    %c0_62 = arith.constant 0 : index
    %c0_63 = arith.constant 0 : index
    %c0_64 = arith.constant 0 : index
    %90 = vector.load %arg5[%c0_62, %c0_63, %c0_64] : memref<9x2x4xf32, #tpu.memory_space<vmem>>, vector<1x2x4xf32>
    %91 = vector.shape_cast %90 : vector<1x2x4xf32> to vector<2x4xf32>
    %cst_65 = arith.constant dense<0.000000e+00> : vector<2x256xf32>
    %92 = tpu.matmul %91, %89, %cst_65 {dimension_numbers = #tpu.dot_dimension_numbers<[1], [0], [0], [1], [0, 0, 1, 1], [], []>} : vector<2x4xf32>, vector<4x256xf32>, vector<2x256xf32> -> vector<2x256xf32>
    %93 = arith.addf %84, %92 : vector<2x256xf32>
    %c16_i32_66 = arith.constant 16 : i32
    %94 = tpu.dynamic_rotate %83 by %c16_i32_66 dim 1 : vector<4x256xf32>, i32 -> vector<4x256xf32>
    %c1_67 = arith.constant 1 : index
    %c0_68 = arith.constant 0 : index
    %c0_69 = arith.constant 0 : index
    %95 = vector.load %arg2[%c1_67, %c0_68, %c0_69] : memref<9x1x256xf32, #tpu.memory_space<vmem>>, vector<1x1x256xf32>
    %96 = vector.shape_cast %95 : vector<1x1x256xf32> to vector<1x256xf32>
    %97 = vector.broadcast %96 : vector<1x256xf32> to vector<4x256xf32>
    %98 = arith.mulf %94, %97 : vector<4x256xf32>
    %c1_70 = arith.constant 1 : index
    %c0_71 = arith.constant 0 : index
    %c0_72 = arith.constant 0 : index
    %99 = vector.load %arg5[%c1_70, %c0_71, %c0_72] : memref<9x2x4xf32, #tpu.memory_space<vmem>>, vector<1x2x4xf32>
    %100 = vector.shape_cast %99 : vector<1x2x4xf32> to vector<2x4xf32>
    %cst_73 = arith.constant dense<0.000000e+00> : vector<2x256xf32>
    %101 = tpu.matmul %100, %98, %cst_73 {dimension_numbers = #tpu.dot_dimension_numbers<[1], [0], [0], [1], [0, 0, 1, 1], [], []>} : vector<2x4xf32>, vector<4x256xf32>, vector<2x256xf32> -> vector<2x256xf32>
    %102 = arith.addf %93, %101 : vector<2x256xf32>
    %c15_i32_74 = arith.constant 15 : i32
    %103 = tpu.dynamic_rotate %83 by %c15_i32_74 dim 1 : vector<4x256xf32>, i32 -> vector<4x256xf32>
    %c2_75 = arith.constant 2 : index
    %c0_76 = arith.constant 0 : index
    %c0_77 = arith.constant 0 : index
    %104 = vector.load %arg2[%c2_75, %c0_76, %c0_77] : memref<9x1x256xf32, #tpu.memory_space<vmem>>, vector<1x1x256xf32>
    %105 = vector.shape_cast %104 : vector<1x1x256xf32> to vector<1x256xf32>
    %106 = vector.broadcast %105 : vector<1x256xf32> to vector<4x256xf32>
    %107 = arith.mulf %103, %106 : vector<4x256xf32>
    %c2_78 = arith.constant 2 : index
    %c0_79 = arith.constant 0 : index
    %c0_80 = arith.constant 0 : index
    %108 = vector.load %arg5[%c2_78, %c0_79, %c0_80] : memref<9x2x4xf32, #tpu.memory_space<vmem>>, vector<1x2x4xf32>
    %109 = vector.shape_cast %108 : vector<1x2x4xf32> to vector<2x4xf32>
    %cst_81 = arith.constant dense<0.000000e+00> : vector<2x256xf32>
    %110 = tpu.matmul %109, %107, %cst_81 {dimension_numbers = #tpu.dot_dimension_numbers<[1], [0], [0], [1], [0, 0, 1, 1], [], []>} : vector<2x4xf32>, vector<4x256xf32>, vector<2x256xf32> -> vector<2x256xf32>
    %111 = arith.addf %102, %110 : vector<2x256xf32>
    %c1_i32_82 = arith.constant 1 : i32
    %112 = tpu.dynamic_rotate %83 by %c1_i32_82 dim 1 : vector<4x256xf32>, i32 -> vector<4x256xf32>
    %c3_83 = arith.constant 3 : index
    %c0_84 = arith.constant 0 : index
    %c0_85 = arith.constant 0 : index
    %113 = vector.load %arg2[%c3_83, %c0_84, %c0_85] : memref<9x1x256xf32, #tpu.memory_space<vmem>>, vector<1x1x256xf32>
    %114 = vector.shape_cast %113 : vector<1x1x256xf32> to vector<1x256xf32>
    %115 = vector.broadcast %114 : vector<1x256xf32> to vector<4x256xf32>
    %116 = arith.mulf %112, %115 : vector<4x256xf32>
    %c3_86 = arith.constant 3 : index
    %c0_87 = arith.constant 0 : index
    %c0_88 = arith.constant 0 : index
    %117 = vector.load %arg5[%c3_86, %c0_87, %c0_88] : memref<9x2x4xf32, #tpu.memory_space<vmem>>, vector<1x2x4xf32>
    %118 = vector.shape_cast %117 : vector<1x2x4xf32> to vector<2x4xf32>
    %cst_89 = arith.constant dense<0.000000e+00> : vector<2x256xf32>
    %119 = tpu.matmul %118, %116, %cst_89 {dimension_numbers = #tpu.dot_dimension_numbers<[1], [0], [0], [1], [0, 0, 1, 1], [], []>} : vector<2x4xf32>, vector<4x256xf32>, vector<2x256xf32> -> vector<2x256xf32>
    %120 = arith.addf %111, %119 : vector<2x256xf32>
    %c4_90 = arith.constant 4 : index
    %c0_91 = arith.constant 0 : index
    %c0_92 = arith.constant 0 : index
    %121 = vector.load %arg5[%c4_90, %c0_91, %c0_92] : memref<9x2x4xf32, #tpu.memory_space<vmem>>, vector<1x2x4xf32>
    %122 = vector.shape_cast %121 : vector<1x2x4xf32> to vector<2x4xf32>
    %cst_93 = arith.constant dense<0.000000e+00> : vector<2x256xf32>
    %123 = tpu.matmul %122, %83, %cst_93 {dimension_numbers = #tpu.dot_dimension_numbers<[1], [0], [0], [1], [0, 0, 1, 1], [], []>} : vector<2x4xf32>, vector<4x256xf32>, vector<2x256xf32> -> vector<2x256xf32>
    %124 = arith.addf %120, %123 : vector<2x256xf32>
    %c255_i32_94 = arith.constant 255 : i32
    %125 = tpu.dynamic_rotate %83 by %c255_i32_94 dim 1 : vector<4x256xf32>, i32 -> vector<4x256xf32>
    %c5_95 = arith.constant 5 : index
    %c0_96 = arith.constant 0 : index
    %c0_97 = arith.constant 0 : index
    %126 = vector.load %arg2[%c5_95, %c0_96, %c0_97] : memref<9x1x256xf32, #tpu.memory_space<vmem>>, vector<1x1x256xf32>
    %127 = vector.shape_cast %126 : vector<1x1x256xf32> to vector<1x256xf32>
    %128 = vector.broadcast %127 : vector<1x256xf32> to vector<4x256xf32>
    %129 = arith.mulf %125, %128 : vector<4x256xf32>
    %c5_98 = arith.constant 5 : index
    %c0_99 = arith.constant 0 : index
    %c0_100 = arith.constant 0 : index
    %130 = vector.load %arg5[%c5_98, %c0_99, %c0_100] : memref<9x2x4xf32, #tpu.memory_space<vmem>>, vector<1x2x4xf32>
    %131 = vector.shape_cast %130 : vector<1x2x4xf32> to vector<2x4xf32>
    %cst_101 = arith.constant dense<0.000000e+00> : vector<2x256xf32>
    %132 = tpu.matmul %131, %129, %cst_101 {dimension_numbers = #tpu.dot_dimension_numbers<[1], [0], [0], [1], [0, 0, 1, 1], [], []>} : vector<2x4xf32>, vector<4x256xf32>, vector<2x256xf32> -> vector<2x256xf32>
    %133 = arith.addf %124, %132 : vector<2x256xf32>
    %c241_i32_102 = arith.constant 241 : i32
    %134 = tpu.dynamic_rotate %83 by %c241_i32_102 dim 1 : vector<4x256xf32>, i32 -> vector<4x256xf32>
    %c6_103 = arith.constant 6 : index
    %c0_104 = arith.constant 0 : index
    %c0_105 = arith.constant 0 : index
    %135 = vector.load %arg2[%c6_103, %c0_104, %c0_105] : memref<9x1x256xf32, #tpu.memory_space<vmem>>, vector<1x1x256xf32>
    %136 = vector.shape_cast %135 : vector<1x1x256xf32> to vector<1x256xf32>
    %137 = vector.broadcast %136 : vector<1x256xf32> to vector<4x256xf32>
    %138 = arith.mulf %134, %137 : vector<4x256xf32>
    %c6_106 = arith.constant 6 : index
    %c0_107 = arith.constant 0 : index
    %c0_108 = arith.constant 0 : index
    %139 = vector.load %arg5[%c6_106, %c0_107, %c0_108] : memref<9x2x4xf32, #tpu.memory_space<vmem>>, vector<1x2x4xf32>
    %140 = vector.shape_cast %139 : vector<1x2x4xf32> to vector<2x4xf32>
    %cst_109 = arith.constant dense<0.000000e+00> : vector<2x256xf32>
    %141 = tpu.matmul %140, %138, %cst_109 {dimension_numbers = #tpu.dot_dimension_numbers<[1], [0], [0], [1], [0, 0, 1, 1], [], []>} : vector<2x4xf32>, vector<4x256xf32>, vector<2x256xf32> -> vector<2x256xf32>
    %142 = arith.addf %133, %141 : vector<2x256xf32>
    %c240_i32_110 = arith.constant 240 : i32
    %143 = tpu.dynamic_rotate %83 by %c240_i32_110 dim 1 : vector<4x256xf32>, i32 -> vector<4x256xf32>
    %c7_111 = arith.constant 7 : index
    %c0_112 = arith.constant 0 : index
    %c0_113 = arith.constant 0 : index
    %144 = vector.load %arg2[%c7_111, %c0_112, %c0_113] : memref<9x1x256xf32, #tpu.memory_space<vmem>>, vector<1x1x256xf32>
    %145 = vector.shape_cast %144 : vector<1x1x256xf32> to vector<1x256xf32>
    %146 = vector.broadcast %145 : vector<1x256xf32> to vector<4x256xf32>
    %147 = arith.mulf %143, %146 : vector<4x256xf32>
    %c7_114 = arith.constant 7 : index
    %c0_115 = arith.constant 0 : index
    %c0_116 = arith.constant 0 : index
    %148 = vector.load %arg5[%c7_114, %c0_115, %c0_116] : memref<9x2x4xf32, #tpu.memory_space<vmem>>, vector<1x2x4xf32>
    %149 = vector.shape_cast %148 : vector<1x2x4xf32> to vector<2x4xf32>
    %cst_117 = arith.constant dense<0.000000e+00> : vector<2x256xf32>
    %150 = tpu.matmul %149, %147, %cst_117 {dimension_numbers = #tpu.dot_dimension_numbers<[1], [0], [0], [1], [0, 0, 1, 1], [], []>} : vector<2x4xf32>, vector<4x256xf32>, vector<2x256xf32> -> vector<2x256xf32>
    %151 = arith.addf %142, %150 : vector<2x256xf32>
    %c239_i32_118 = arith.constant 239 : i32
    %152 = tpu.dynamic_rotate %83 by %c239_i32_118 dim 1 : vector<4x256xf32>, i32 -> vector<4x256xf32>
    %c8_119 = arith.constant 8 : index
    %c0_120 = arith.constant 0 : index
    %c0_121 = arith.constant 0 : index
    %153 = vector.load %arg2[%c8_119, %c0_120, %c0_121] : memref<9x1x256xf32, #tpu.memory_space<vmem>>, vector<1x1x256xf32>
    %154 = vector.shape_cast %153 : vector<1x1x256xf32> to vector<1x256xf32>
    %155 = vector.broadcast %154 : vector<1x256xf32> to vector<4x256xf32>
    %156 = arith.mulf %152, %155 : vector<4x256xf32>
    %c8_122 = arith.constant 8 : index
    %c0_123 = arith.constant 0 : index
    %c0_124 = arith.constant 0 : index
    %157 = vector.load %arg5[%c8_122, %c0_123, %c0_124] : memref<9x2x4xf32, #tpu.memory_space<vmem>>, vector<1x2x4xf32>
    %158 = vector.shape_cast %157 : vector<1x2x4xf32> to vector<2x4xf32>
    %cst_125 = arith.constant dense<0.000000e+00> : vector<2x256xf32>
    %159 = tpu.matmul %158, %156, %cst_125 {dimension_numbers = #tpu.dot_dimension_numbers<[1], [0], [0], [1], [0, 0, 1, 1], [], []>} : vector<2x4xf32>, vector<4x256xf32>, vector<2x256xf32> -> vector<2x256xf32>
    %160 = arith.addf %151, %159 : vector<2x256xf32>
    %c0_126 = arith.constant 0 : index
    %c0_127 = arith.constant 0 : index
    %161 = vector.load %arg6[%c0_126, %c0_127] : memref<2x1xf32, #tpu.memory_space<vmem>>, vector<2x1xf32>
    %162 = vector.broadcast %161 : vector<2x1xf32> to vector<2x256xf32>
    %163 = arith.addf %160, %162 : vector<2x256xf32>
    %cst_128 = arith.constant 0.000000e+00 : f32
    %164 = vector.broadcast %cst_128 : f32 to vector<2x256xf32>
    %165 = arith.maximumf %163, %164 : vector<2x256xf32>
    %cst_129 = arith.constant 0.000000e+00 : f32
    %166 = vector.broadcast %cst_129 : f32 to vector<2x256xf32>
    %c17_i32_130 = arith.constant 17 : i32
    %167 = tpu.dynamic_rotate %165 by %c17_i32_130 dim 1 : vector<2x256xf32>, i32 -> vector<2x256xf32>
    %c0_131 = arith.constant 0 : index
    %c0_132 = arith.constant 0 : index
    %c0_133 = arith.constant 0 : index
    %168 = vector.load %arg2[%c0_131, %c0_132, %c0_133] : memref<9x1x256xf32, #tpu.memory_space<vmem>>, vector<1x1x256xf32>
    %169 = vector.shape_cast %168 : vector<1x1x256xf32> to vector<1x256xf32>
    %170 = vector.broadcast %169 : vector<1x256xf32> to vector<2x256xf32>
    %171 = arith.mulf %167, %170 : vector<2x256xf32>
    %c0_134 = arith.constant 0 : index
    %c0_135 = arith.constant 0 : index
    %c0_136 = arith.constant 0 : index
    %172 = vector.load %arg7[%c0_134, %c0_135, %c0_136] : memref<9x2x2xf32, #tpu.memory_space<vmem>>, vector<1x2x2xf32>
    %173 = vector.shape_cast %172 : vector<1x2x2xf32> to vector<2x2xf32>
    %cst_137 = arith.constant dense<0.000000e+00> : vector<2x256xf32>
    %174 = tpu.matmul %173, %171, %cst_137 {dimension_numbers = #tpu.dot_dimension_numbers<[1], [0], [0], [1], [0, 0, 1, 1], [], []>} : vector<2x2xf32>, vector<2x256xf32>, vector<2x256xf32> -> vector<2x256xf32>
    %175 = arith.addf %166, %174 : vector<2x256xf32>
    %c16_i32_138 = arith.constant 16 : i32
    %176 = tpu.dynamic_rotate %165 by %c16_i32_138 dim 1 : vector<2x256xf32>, i32 -> vector<2x256xf32>
    %c1_139 = arith.constant 1 : index
    %c0_140 = arith.constant 0 : index
    %c0_141 = arith.constant 0 : index
    %177 = vector.load %arg2[%c1_139, %c0_140, %c0_141] : memref<9x1x256xf32, #tpu.memory_space<vmem>>, vector<1x1x256xf32>
    %178 = vector.shape_cast %177 : vector<1x1x256xf32> to vector<1x256xf32>
    %179 = vector.broadcast %178 : vector<1x256xf32> to vector<2x256xf32>
    %180 = arith.mulf %176, %179 : vector<2x256xf32>
    %c1_142 = arith.constant 1 : index
    %c0_143 = arith.constant 0 : index
    %c0_144 = arith.constant 0 : index
    %181 = vector.load %arg7[%c1_142, %c0_143, %c0_144] : memref<9x2x2xf32, #tpu.memory_space<vmem>>, vector<1x2x2xf32>
    %182 = vector.shape_cast %181 : vector<1x2x2xf32> to vector<2x2xf32>
    %cst_145 = arith.constant dense<0.000000e+00> : vector<2x256xf32>
    %183 = tpu.matmul %182, %180, %cst_145 {dimension_numbers = #tpu.dot_dimension_numbers<[1], [0], [0], [1], [0, 0, 1, 1], [], []>} : vector<2x2xf32>, vector<2x256xf32>, vector<2x256xf32> -> vector<2x256xf32>
    %184 = arith.addf %175, %183 : vector<2x256xf32>
    %c15_i32_146 = arith.constant 15 : i32
    %185 = tpu.dynamic_rotate %165 by %c15_i32_146 dim 1 : vector<2x256xf32>, i32 -> vector<2x256xf32>
    %c2_147 = arith.constant 2 : index
    %c0_148 = arith.constant 0 : index
    %c0_149 = arith.constant 0 : index
    %186 = vector.load %arg2[%c2_147, %c0_148, %c0_149] : memref<9x1x256xf32, #tpu.memory_space<vmem>>, vector<1x1x256xf32>
    %187 = vector.shape_cast %186 : vector<1x1x256xf32> to vector<1x256xf32>
    %188 = vector.broadcast %187 : vector<1x256xf32> to vector<2x256xf32>
    %189 = arith.mulf %185, %188 : vector<2x256xf32>
    %c2_150 = arith.constant 2 : index
    %c0_151 = arith.constant 0 : index
    %c0_152 = arith.constant 0 : index
    %190 = vector.load %arg7[%c2_150, %c0_151, %c0_152] : memref<9x2x2xf32, #tpu.memory_space<vmem>>, vector<1x2x2xf32>
    %191 = vector.shape_cast %190 : vector<1x2x2xf32> to vector<2x2xf32>
    %cst_153 = arith.constant dense<0.000000e+00> : vector<2x256xf32>
    %192 = tpu.matmul %191, %189, %cst_153 {dimension_numbers = #tpu.dot_dimension_numbers<[1], [0], [0], [1], [0, 0, 1, 1], [], []>} : vector<2x2xf32>, vector<2x256xf32>, vector<2x256xf32> -> vector<2x256xf32>
    %193 = arith.addf %184, %192 : vector<2x256xf32>
    %c1_i32_154 = arith.constant 1 : i32
    %194 = tpu.dynamic_rotate %165 by %c1_i32_154 dim 1 : vector<2x256xf32>, i32 -> vector<2x256xf32>
    %c3_155 = arith.constant 3 : index
    %c0_156 = arith.constant 0 : index
    %c0_157 = arith.constant 0 : index
    %195 = vector.load %arg2[%c3_155, %c0_156, %c0_157] : memref<9x1x256xf32, #tpu.memory_space<vmem>>, vector<1x1x256xf32>
    %196 = vector.shape_cast %195 : vector<1x1x256xf32> to vector<1x256xf32>
    %197 = vector.broadcast %196 : vector<1x256xf32> to vector<2x256xf32>
    %198 = arith.mulf %194, %197 : vector<2x256xf32>
    %c3_158 = arith.constant 3 : index
    %c0_159 = arith.constant 0 : index
    %c0_160 = arith.constant 0 : index
    %199 = vector.load %arg7[%c3_158, %c0_159, %c0_160] : memref<9x2x2xf32, #tpu.memory_space<vmem>>, vector<1x2x2xf32>
    %200 = vector.shape_cast %199 : vector<1x2x2xf32> to vector<2x2xf32>
    %cst_161 = arith.constant dense<0.000000e+00> : vector<2x256xf32>
    %201 = tpu.matmul %200, %198, %cst_161 {dimension_numbers = #tpu.dot_dimension_numbers<[1], [0], [0], [1], [0, 0, 1, 1], [], []>} : vector<2x2xf32>, vector<2x256xf32>, vector<2x256xf32> -> vector<2x256xf32>
    %202 = arith.addf %193, %201 : vector<2x256xf32>
    %c4_162 = arith.constant 4 : index
    %c0_163 = arith.constant 0 : index
    %c0_164 = arith.constant 0 : index
    %203 = vector.load %arg7[%c4_162, %c0_163, %c0_164] : memref<9x2x2xf32, #tpu.memory_space<vmem>>, vector<1x2x2xf32>
    %204 = vector.shape_cast %203 : vector<1x2x2xf32> to vector<2x2xf32>
    %cst_165 = arith.constant dense<0.000000e+00> : vector<2x256xf32>
    %205 = tpu.matmul %204, %165, %cst_165 {dimension_numbers = #tpu.dot_dimension_numbers<[1], [0], [0], [1], [0, 0, 1, 1], [], []>} : vector<2x2xf32>, vector<2x256xf32>, vector<2x256xf32> -> vector<2x256xf32>
    %206 = arith.addf %202, %205 : vector<2x256xf32>
    %c255_i32_166 = arith.constant 255 : i32
    %207 = tpu.dynamic_rotate %165 by %c255_i32_166 dim 1 : vector<2x256xf32>, i32 -> vector<2x256xf32>
    %c5_167 = arith.constant 5 : index
    %c0_168 = arith.constant 0 : index
    %c0_169 = arith.constant 0 : index
    %208 = vector.load %arg2[%c5_167, %c0_168, %c0_169] : memref<9x1x256xf32, #tpu.memory_space<vmem>>, vector<1x1x256xf32>
    %209 = vector.shape_cast %208 : vector<1x1x256xf32> to vector<1x256xf32>
    %210 = vector.broadcast %209 : vector<1x256xf32> to vector<2x256xf32>
    %211 = arith.mulf %207, %210 : vector<2x256xf32>
    %c5_170 = arith.constant 5 : index
    %c0_171 = arith.constant 0 : index
    %c0_172 = arith.constant 0 : index
    %212 = vector.load %arg7[%c5_170, %c0_171, %c0_172] : memref<9x2x2xf32, #tpu.memory_space<vmem>>, vector<1x2x2xf32>
    %213 = vector.shape_cast %212 : vector<1x2x2xf32> to vector<2x2xf32>
    %cst_173 = arith.constant dense<0.000000e+00> : vector<2x256xf32>
    %214 = tpu.matmul %213, %211, %cst_173 {dimension_numbers = #tpu.dot_dimension_numbers<[1], [0], [0], [1], [0, 0, 1, 1], [], []>} : vector<2x2xf32>, vector<2x256xf32>, vector<2x256xf32> -> vector<2x256xf32>
    %215 = arith.addf %206, %214 : vector<2x256xf32>
    %c241_i32_174 = arith.constant 241 : i32
    %216 = tpu.dynamic_rotate %165 by %c241_i32_174 dim 1 : vector<2x256xf32>, i32 -> vector<2x256xf32>
    %c6_175 = arith.constant 6 : index
    %c0_176 = arith.constant 0 : index
    %c0_177 = arith.constant 0 : index
    %217 = vector.load %arg2[%c6_175, %c0_176, %c0_177] : memref<9x1x256xf32, #tpu.memory_space<vmem>>, vector<1x1x256xf32>
    %218 = vector.shape_cast %217 : vector<1x1x256xf32> to vector<1x256xf32>
    %219 = vector.broadcast %218 : vector<1x256xf32> to vector<2x256xf32>
    %220 = arith.mulf %216, %219 : vector<2x256xf32>
    %c6_178 = arith.constant 6 : index
    %c0_179 = arith.constant 0 : index
    %c0_180 = arith.constant 0 : index
    %221 = vector.load %arg7[%c6_178, %c0_179, %c0_180] : memref<9x2x2xf32, #tpu.memory_space<vmem>>, vector<1x2x2xf32>
    %222 = vector.shape_cast %221 : vector<1x2x2xf32> to vector<2x2xf32>
    %cst_181 = arith.constant dense<0.000000e+00> : vector<2x256xf32>
    %223 = tpu.matmul %222, %220, %cst_181 {dimension_numbers = #tpu.dot_dimension_numbers<[1], [0], [0], [1], [0, 0, 1, 1], [], []>} : vector<2x2xf32>, vector<2x256xf32>, vector<2x256xf32> -> vector<2x256xf32>
    %224 = arith.addf %215, %223 : vector<2x256xf32>
    %c240_i32_182 = arith.constant 240 : i32
    %225 = tpu.dynamic_rotate %165 by %c240_i32_182 dim 1 : vector<2x256xf32>, i32 -> vector<2x256xf32>
    %c7_183 = arith.constant 7 : index
    %c0_184 = arith.constant 0 : index
    %c0_185 = arith.constant 0 : index
    %226 = vector.load %arg2[%c7_183, %c0_184, %c0_185] : memref<9x1x256xf32, #tpu.memory_space<vmem>>, vector<1x1x256xf32>
    %227 = vector.shape_cast %226 : vector<1x1x256xf32> to vector<1x256xf32>
    %228 = vector.broadcast %227 : vector<1x256xf32> to vector<2x256xf32>
    %229 = arith.mulf %225, %228 : vector<2x256xf32>
    %c7_186 = arith.constant 7 : index
    %c0_187 = arith.constant 0 : index
    %c0_188 = arith.constant 0 : index
    %230 = vector.load %arg7[%c7_186, %c0_187, %c0_188] : memref<9x2x2xf32, #tpu.memory_space<vmem>>, vector<1x2x2xf32>
    %231 = vector.shape_cast %230 : vector<1x2x2xf32> to vector<2x2xf32>
    %cst_189 = arith.constant dense<0.000000e+00> : vector<2x256xf32>
    %232 = tpu.matmul %231, %229, %cst_189 {dimension_numbers = #tpu.dot_dimension_numbers<[1], [0], [0], [1], [0, 0, 1, 1], [], []>} : vector<2x2xf32>, vector<2x256xf32>, vector<2x256xf32> -> vector<2x256xf32>
    %233 = arith.addf %224, %232 : vector<2x256xf32>
    %c239_i32_190 = arith.constant 239 : i32
    %234 = tpu.dynamic_rotate %165 by %c239_i32_190 dim 1 : vector<2x256xf32>, i32 -> vector<2x256xf32>
    %c8_191 = arith.constant 8 : index
    %c0_192 = arith.constant 0 : index
    %c0_193 = arith.constant 0 : index
    %235 = vector.load %arg2[%c8_191, %c0_192, %c0_193] : memref<9x1x256xf32, #tpu.memory_space<vmem>>, vector<1x1x256xf32>
    %236 = vector.shape_cast %235 : vector<1x1x256xf32> to vector<1x256xf32>
    %237 = vector.broadcast %236 : vector<1x256xf32> to vector<2x256xf32>
    %238 = arith.mulf %234, %237 : vector<2x256xf32>
    %c8_194 = arith.constant 8 : index
    %c0_195 = arith.constant 0 : index
    %c0_196 = arith.constant 0 : index
    %239 = vector.load %arg7[%c8_194, %c0_195, %c0_196] : memref<9x2x2xf32, #tpu.memory_space<vmem>>, vector<1x2x2xf32>
    %240 = vector.shape_cast %239 : vector<1x2x2xf32> to vector<2x2xf32>
    %cst_197 = arith.constant dense<0.000000e+00> : vector<2x256xf32>
    %241 = tpu.matmul %240, %238, %cst_197 {dimension_numbers = #tpu.dot_dimension_numbers<[1], [0], [0], [1], [0, 0, 1, 1], [], []>} : vector<2x2xf32>, vector<2x256xf32>, vector<2x256xf32> -> vector<2x256xf32>
    %242 = arith.addf %233, %241 : vector<2x256xf32>
    %c0_198 = arith.constant 0 : index
    %c0_199 = arith.constant 0 : index
    %243 = vector.load %arg8[%c0_198, %c0_199] : memref<2x1xf32, #tpu.memory_space<vmem>>, vector<2x1xf32>
    %244 = vector.broadcast %243 : vector<2x1xf32> to vector<2x256xf32>
    %245 = arith.addf %242, %244 : vector<2x256xf32>
    %cst_200 = arith.constant 0.000000e+00 : f32
    %246 = vector.broadcast %cst_200 : f32 to vector<2x256xf32>
    %247 = arith.maximumf %245, %246 : vector<2x256xf32>
    %c0_201 = arith.constant 0 : index
    %c0_202 = arith.constant 0 : index
    %248 = vector.load %arg9[%c0_201, %c0_202] : memref<8x4xf32, #tpu.memory_space<vmem>>, vector<8x4xf32>
    %cst_203 = arith.constant dense<0.000000e+00> : vector<8x256xf32>
    %249 = tpu.matmul %248, %1, %cst_203 {dimension_numbers = #tpu.dot_dimension_numbers<[1], [0], [0], [1], [0, 0, 1, 1], [], []>} : vector<8x4xf32>, vector<4x256xf32>, vector<8x256xf32> -> vector<8x256xf32>
    %c0_204 = arith.constant 0 : index
    %c0_205 = arith.constant 0 : index
    %250 = vector.load %arg10[%c0_204, %c0_205] : memref<8x1xf32, #tpu.memory_space<vmem>>, vector<8x1xf32>
    %251 = vector.broadcast %250 : vector<8x1xf32> to vector<8x256xf32>
    %252 = arith.addf %249, %251 : vector<8x256xf32>
    %253 = vector.extract_strided_slice %252 {offsets = [0, 0], sizes = [4, 256], strides = [1, 1]} : vector<8x256xf32> to vector<4x256xf32>
    %254 = arith.addf %83, %253 : vector<4x256xf32>
    %c0_206 = arith.constant 0 : index
    %c0_207 = arith.constant 0 : index
    %c0_208 = arith.constant 0 : index
    %255 = vector.load %arg11[%c0_206, %c0_207, %c0_208] : memref<1x8x256xf32, #tpu.memory_space<vmem>>, vector<1x4x256xf32>
    %256 = vector.shape_cast %255 : vector<1x4x256xf32> to vector<4x256xf32>
    %257 = vector.shape_cast %254 : vector<4x256xf32> to vector<1x4x256xf32>
    tpu.vector_store %arg11[%c0_206, %c0_207, %c0_208], %257 {strides = array<i32>} : memref<1x8x256xf32, #tpu.memory_space<vmem>>, vector<1x4x256xf32>,
    %258 = vector.extract_strided_slice %252 {offsets = [4, 0], sizes = [2, 256], strides = [1, 1]} : vector<8x256xf32> to vector<2x256xf32>
    %259 = arith.addf %165, %258 : vector<2x256xf32>
    %c0_209 = arith.constant 0 : index
    %c4_210 = arith.constant 4 : index
    %c0_211 = arith.constant 0 : index
    %260 = vector.load %arg11[%c0_209, %c4_210, %c0_211] : memref<1x8x256xf32, #tpu.memory_space<vmem>>, vector<1x2x256xf32>
    %261 = vector.shape_cast %260 : vector<1x2x256xf32> to vector<2x256xf32>
    %262 = vector.shape_cast %259 : vector<2x256xf32> to vector<1x2x256xf32>
    tpu.vector_store %arg11[%c0_209, %c4_210, %c0_211], %262 {strides = array<i32>} : memref<1x8x256xf32, #tpu.memory_space<vmem>>, vector<1x2x256xf32>,
    %263 = vector.extract_strided_slice %252 {offsets = [6, 0], sizes = [2, 256], strides = [1, 1]} : vector<8x256xf32> to vector<2x256xf32>
    %264 = arith.addf %247, %263 : vector<2x256xf32>
    %c0_212 = arith.constant 0 : index
    %c6_213 = arith.constant 6 : index
    %c0_214 = arith.constant 0 : index
    %265 = vector.load %arg11[%c0_212, %c6_213, %c0_214] : memref<1x8x256xf32, #tpu.memory_space<vmem>>, vector<1x2x256xf32>
    %266 = vector.shape_cast %265 : vector<1x2x256xf32> to vector<2x256xf32>
    %267 = vector.shape_cast %264 : vector<2x256xf32> to vector<1x2x256xf32>
    tpu.vector_store %arg11[%c0_212, %c6_213, %c0_214], %267 {strides = array<i32>} : memref<1x8x256xf32, #tpu.memory_space<vmem>>, vector<1x2x256xf32>,
    return
  }
  func.func @transform_0(%arg0: i32) -> (i32, i32, i32) {
    %c0_i32 = arith.constant 0 : i32
    %c0_i32_0 = arith.constant 0 : i32
    %c0_i32_1 = arith.constant 0 : i32
    return %arg0, %c0_i32, %c0_i32_0 : i32, i32, i32
  }
  func.func @transform_1(%arg0: i32) -> (i32, i32, i32) {
    %c0_i32 = arith.constant 0 : i32
    %c0_i32_0 = arith.constant 0 : i32
    %c0_i32_1 = arith.constant 0 : i32
    %c0_i32_2 = arith.constant 0 : i32
    return %c0_i32, %c0_i32_0, %c0_i32_1 : i32, i32, i32
  }
  func.func @transform_2(%arg0: i32) -> (i32, i32, i32) {
    %c0_i32 = arith.constant 0 : i32
    %c0_i32_0 = arith.constant 0 : i32
    %c0_i32_1 = arith.constant 0 : i32
    %c0_i32_2 = arith.constant 0 : i32
    return %c0_i32, %c0_i32_0, %c0_i32_1 : i32, i32, i32
  }
  func.func @transform_3(%arg0: i32) -> (i32, i32) {
    %c0_i32 = arith.constant 0 : i32
    %c0_i32_0 = arith.constant 0 : i32
    %c0_i32_1 = arith.constant 0 : i32
    return %c0_i32, %c0_i32_0 : i32, i32
  }
  func.func @transform_4(%arg0: i32) -> (i32, i32, i32) {
    %c0_i32 = arith.constant 0 : i32
    %c0_i32_0 = arith.constant 0 : i32
    %c0_i32_1 = arith.constant 0 : i32
    %c0_i32_2 = arith.constant 0 : i32
    return %c0_i32, %c0_i32_0, %c0_i32_1 : i32, i32, i32
  }
  func.func @transform_5(%arg0: i32) -> (i32, i32) {
    %c0_i32 = arith.constant 0 : i32
    %c0_i32_0 = arith.constant 0 : i32
    %c0_i32_1 = arith.constant 0 : i32
    return %c0_i32, %c0_i32_0 : i32, i32
  }
  func.func @transform_6(%arg0: i32) -> (i32, i32, i32) {
    %c0_i32 = arith.constant 0 : i32
    %c0_i32_0 = arith.constant 0 : i32
    %c0_i32_1 = arith.constant 0 : i32
    %c0_i32_2 = arith.constant 0 : i32
    return %c0_i32, %c0_i32_0, %c0_i32_1 : i32, i32, i32
  }
  func.func @transform_7(%arg0: i32) -> (i32, i32) {
    %c0_i32 = arith.constant 0 : i32
    %c0_i32_0 = arith.constant 0 : i32
    %c0_i32_1 = arith.constant 0 : i32
    return %c0_i32, %c0_i32_0 : i32, i32
  }
  func.func @transform_8(%arg0: i32) -> (i32, i32) {
    %c0_i32 = arith.constant 0 : i32
    %c0_i32_0 = arith.constant 0 : i32
    %c0_i32_1 = arith.constant 0 : i32
    return %c0_i32, %c0_i32_0 : i32, i32
  }
  func.func @transform_9(%arg0: i32) -> (i32, i32) {
    %c0_i32 = arith.constant 0 : i32
    %c0_i32_0 = arith.constant 0 : i32
    %c0_i32_1 = arith.constant 0 : i32
    return %c0_i32, %c0_i32_0 : i32, i32
  }
  func.func @transform_10(%arg0: i32) -> (i32, i32, i32) {
    %c0_i32 = arith.constant 0 : i32
    %c0_i32_0 = arith.constant 0 : i32
    %c0_i32_1 = arith.constant 0 : i32
    return %arg0, %c0_i32, %c0_i32_0 : i32, i32, i32
  }
}

</mosaic_0001>

<bundles_post_ra>
// kernel: hpm_block_forward.1
= control target key start
LH: loop header
LB: loop body
LE: loop exit
PB: predicated region body
PF: predicated region fallthrough
CT: control target
= control target key end

     0   :  { %s3394_s13 = smov 0   ;;  %s3989_s0 = inlined_call_operand.vmem [shape: f32[2,4,256], index: 0, kind: input, shape index: {}]   ;;  %s3990_s1 = inlined_call_operand.vmem [shape: f32[9,1,256], index: 1, kind: input, shape index: {}]   ;;  %s3991_s2 = inlined_call_operand.vmem [shape: f32[9,4,4], index: 2, kind: input, shape index: {}]   ;;  %s3992_s3 = inlined_call_operand.vmem [shape: f32[4,1], index: 3, kind: input, shape index: {}]   ;;  %s3993_s4 = inlined_call_operand.vmem [shape: f32[9,2,4], index: 4, kind: input, shape index: {}]   ;;  %s3994_s5 = inlined_call_operand.vmem [shape: f32[2,1], index: 5, kind: input, shape index: {}]   ;;  %s3995_s6 = inlined_call_operand.vmem [shape: f32[9,2,2], index: 6, kind: input, shape index: {}]   ;;  %s3996_s7 = inlined_call_operand.vmem [shape: f32[2,1], index: 7, kind: input, shape index: {}]   ;;  %s3997_s8 = inlined_call_operand.vmem [shape: f32[8,4], index: 8, kind: input, shape index: {}]   ;;  %s3998_s9 = inlined_call_operand.vmem [shape: f32[8,1], index: 9, kind: input, shape index: {}]   ;;  %s3999_s10 = inlined_call_operand.vmem [shape: f32[2,8,256], index: 10, kind: output, shape index: {}]  }
   0x1 LB: > { %s3124_s14 = sadd.s32 4294967295, %s3327_s13   ;;  %p3128_p0 = scmp.ge.s32.totalorder %s3327_s13, 1  ;;  %s3327_s13 = sphi %s3394_s13, %s20_s13  }
   0x2   : > { %p312_p1 = scmp.lt.s32.totalorder %s3327_s13, 3 }
   0x4   : > { %p313_p2 = pnand %p3128_p0, %p312_p1 }
   0x5   : > { %p350_p3 = scmp.lt.s32.totalorder (!%p313_p2), %s3124_s14, 1  ;;  %v3329_v0 = vmov (!%p313_p2), 0.0   ;;  %vm416_vm0 = vcmask (!%p313_p2), 1043456   ;;  %s3330_s19 = smov (!%p313_p2), 127   ;;  %vm412_vm1 = vcmask (!%p313_p2), 31744   ;;  %v3336_v4 = vmov (!%p313_p2), 0  }
   0x6   : > { %316 = sbr.rel (%p313_p2) target bundleno = 1194 (0x4aa), region = 60  ;;  %859 = vmatprep.mubr.f32.mxu0 (!%p313_p2), %v3329_v0  ;;  %487 = vmatprep.mubr.f32.mxu1 (!%p313_p2), %v3329_v0  ;;  %s3331_s20 = smov (!%p313_p2), 16   ;;  %v3151_v3 = vld [vmem:[%s3991_s2 + $0x10] sm:$0xf] (!%p313_p2)  ;;  %v1292_v5 = vld [vmem:[%s3992_s3] sm:$0xf] (!%p313_p2)  ;;  %v368_v6 = vlaneseq (!%p313_p2) }
   0x7   : > { %s3332_s23 = smov (!%p313_p2), 17   ;;  %s3333_s24 = smov (!%p313_p2), 113   ;;  %3318 = vset.pattern.permute.xlu0 (!%p313_p2), %v3336_v4  ;;  %3319 = vset.pattern.permute.xlu1 (!%p313_p2), %v3336_v4  ;;  %v3155_v11 = vld [vmem:[%s3990_s1 + $0xa] sm:$0x3] (!%p313_p2)  ;;  %v3133_v12 = vld [vmem:[%s3990_s1 + $0x2] sm:$0x3] (!%p313_p2) }
   0x8   : > { %s3334_s25 = smov (!%p313_p2), 15   ;;  %s3335_s26 = smov (!%p313_p2), 112   ;;  %v376_v7 = vshrl.u32 (!%p313_p2), %v368_v6, 7  ;;  %v3460_v8 = vand.u32 (!%p313_p2), 127, %v368_v6  ;;  %v373_v15 = vld [vmem:[%s3990_s1] sm:$0x3] (!%p313_p2) }
   0x9   : > { %s3337_s27 = smov (!%p313_p2), 1   ;;  %s3338_s28 = smov (!%p313_p2), 111   ;;  %v3160_v32 = vld [vmem:[%s3990_s1 + $0xc] sm:$0x3] (!%p313_p2)  ;;  %v3134_v33 = vld [vmem:[%s3991_s2 + $0x4] sm:$0xf] (!%p313_p2) }
   0xa   : > { %v3462_v9 = vsub.s32 (!%p313_p2), 0, %v376_v7  ;;  %v3464_v10 = vsub.s32 (!%p313_p2), 1, %v376_v7  ;;  %vm872_vm2 = vcmp.lt.s32.totalorder (!%p313_p2), %v3460_v8, 127  ;;  %vm392_vm3 = vcmp.lt.s32.totalorder (!%p313_p2), %v3460_v8, 16  ;;  %v3156_v34 = vld [vmem:[%s3991_s2 + $0x14] sm:$0xf] (!%p313_p2) }
   0xb   : > { %vm370_vm4 = vcmp.lt.s32.totalorder (!%p313_p2), %v3460_v8, 17  ;;  %vm978_vm5 = vcmp.lt.s32.totalorder (!%p313_p2), %v3460_v8, 113  ;;  %v3141_v43 = vld [vmem:[%s3990_s1 + $0x4] sm:$0x3] (!%p313_p2)  ;;  %vm578_vm6 = vcmp.lt.s32.totalorder (!%p313_p2), %v3460_v8, 15  ;;  %vm1084_vm7 = vcmp.lt.s32.totalorder (!%p313_p2), %v3460_v8, 112 }
   0xc   : > { %v3478_v16 = vrot.slane (!%p313_p2), %v3155_v11, %v3462_v9  ;;  %v3481_v17 = vrot.slane (!%p313_p2), %v3155_v11, %v3464_v10  ;;  %v3484_v18 = vrot.slane (!%p313_p2), %v3133_v12, %v3462_v9  ;;  %v3487_v19 = vrot.slane (!%p313_p2), %v3133_v12, %v3464_v10  ;;  %v3165_v52 = vld [vmem:[%s3990_s1 + $0xe] sm:$0x3] (!%p313_p2)  ;;  %v387_v53 = vld [vmem:[%s3991_s2] sm:$0xf] (!%p313_p2)  ;;  %v3161_v54 = vld [vmem:[%s3991_s2 + $0x18] sm:$0xf] (!%p313_p2) }
   0xd   : > { %s4001_s14 = smov (!%p350_p3, %s3124_s14), 1  ;;  %v3491_v22 = vrot.slane %v373_v15, %v3462_v9  ;;  %v3494_v23 = vrot.slane %v373_v15, %v3464_v10  ;;  %v3526_v39 = vrot.slane %v3160_v32, %v3462_v9  ;;  %v3534_v42 = vrot.slane %v3160_v32, %v3464_v10  ;;  %v3146_v63 = vld [vmem:[%s3990_s1 + $0x6] sm:$0x3]  ;;  %v3142_v15 = vld [vmem:[%s3991_s2 + $0x8] sm:$0xf] }
   0xe   : > { %s3250_s15 = sshll.u32 %s4001_s14, 3  ;;  %v3551_v50 = vrot.slane %v3141_v43, %v3462_v9  ;;  %v3554_v51 = vrot.slane %v3141_v43, %v3464_v10  ;;  %v3572_v59 = vrot.slane %v3165_v52, %v3462_v9  ;;  %v3580_v62 = vrot.slane %v3165_v52, %v3464_v10  ;;  %v2117_v52 = vld [vmem:[%s3994_s5] sm:$0x3] }
   0xf   : > { %s354_s18 = scalar_lea.vmem %s3989_s0, %s3250_s15  ;;  %vm684_vm8 = vcmp.lt.s32.totalorder %v3460_v8, 1  ;;  %v3597_v12 = vrot.slane %v3146_v63, %v3462_v9  ;;  %vm1190_vm9 = vcmp.lt.s32.totalorder %v3460_v8, 111  ;;  %vm2150_vm10 = vcmask 1041408   ;;  %s3251_s15 = sshll.u32 %s4001_s14, 4 }
  0x10   : > { %v3410_v1 = vld [vmem:[%s354_s18] sm:$0xff]  ;;  %vm2146_vm11 = vcmask 15360  }
  0x11   : > { %868 = vrot.lane.b32.xlu1 %v3410_v1, %s3330_s19  ;;  %388 = vrot.lane.b32.xlu0 %v3410_v1, %s3331_s20  ;;  %v3418_v2 = vcombine.high %v3410_v1, %v3410_v1 }
  0x13   : > { %3152 = vmatprep.subr.msk.mxu0 %vm416_vm0, %v3418_v2 }
  0x14   : > { %3153 = vmatpush1.msk.msra.mxu0 %vm416_vm0, %v3410_v1 }
  0x15   : > { %870 = vrot.lane.b32.xlu1 %v3418_v2, %s3330_s19  ;;  %390 = vrot.lane.b32.xlu0 %v3418_v2, %s3331_s20 }
  0x16   : > { %3154 = vmatmul.mubr.msk.f32.vlgmr.msra.gmra.mrb[0].mxu0 %vm412_vm1, %v3151_v3 }
  0x17   : > { %965 = vmatprep.mubr.f32.mxu0 %v3329_v0 }
  0x19   : > { %366 = vrot.lane.b32.xlu1 %v3418_v2, %s3332_s23  ;;  %364 = vrot.lane.b32.xlu0 %v3410_v1, %s3332_s23 }
  0x1d   : > { %976 = vrot.lane.b32.xlu1 %v3418_v2, %s3333_s24  ;;  %974 = vrot.lane.b32.xlu0 %v3410_v1, %s3333_s24 }
  0x21   : > { %576 = vrot.lane.b32.xlu1 %v3418_v2, %s3334_s25  ;;  %574 = vrot.lane.b32.xlu0 %v3410_v1, %s3334_s25 }
  0x25   : > { %1082 = vrot.lane.b32.xlu1 %v3418_v2, %s3335_s26  ;;  %1080 = vrot.lane.b32.xlu0 %v3410_v1, %s3335_s26 }
  0x29   : > { %682 = vrot.lane.b32.xlu1 %v3418_v2, %s3337_s27  ;;  %680 = vrot.lane.b32.xlu0 %v3410_v1, %s3337_s27 }
  0x2d   : > { %1188 = vrot.lane.b32.xlu1 %v3418_v2, %s3338_s28  ;;  %1186 = vrot.lane.b32.xlu0 %v3410_v1, %s3338_s28 }
  0x31   : > { %1295 = vperm.xlu0 %3318, %v1292_v5  }
  0x83   : > { %v869_v13 = vpop.permute.xlu1 %868  ;;  %v389_v14 = vpop.permute.xlu0 %388 }
  0x87   : > { %v871_v20 = vpop.permute.xlu1 %870  ;;  %v391_v21 = vpop.permute.xlu0 %390 }
  0x88   : > { %v873_v24 = vsel %vm872_vm2, %v869_v13, %v871_v20  ;;  %v874_v25 = vsel %vm872_vm2, %v871_v20, %v869_v13  ;;  %v393_v26 = vsel %vm392_vm3, %v389_v14, %v391_v21  ;;  %v394_v27 = vsel %vm392_vm3, %v391_v21, %v389_v14  ;;  %v3170_v14 = vld [vmem:[%s3990_s1 + $0x10] sm:$0x3]  ;;  %v3166_v20 = vld [vmem:[%s3991_s2 + $0x1c] sm:$0xf] }
  0x89   : > { %v888_v28 = vmul.f32 %v3478_v16, %v873_v24  ;;  %v889_v29 = vmul.f32 %v3481_v17, %v874_v25  ;;  %v408_v30 = vmul.f32 %v3484_v18, %v394_v27  ;;  %v409_v31 = vmul.f32 %v3487_v19, %v393_v26 }
  0x8a   : > { %v3600_v13 = vrot.slane %v3146_v63, %v3464_v10  ;;  %v3618_v27 = vrot.slane %v3170_v14, %v3462_v9 }
  0x8b   : > { %v367_v35 = vpop.permute.xlu1 %366  ;;  %3135 = vmatprep.subr.msk.mxu1 %vm416_vm0, %v409_v31  ;;  %v365_v36 = vpop.permute.xlu0 %364  ;;  %3157 = vmatprep.subr.msk.mxu0 %vm416_vm0, %v889_v29 }
  0x8c   : > { %v371_v37 = vsel %vm370_vm4, %v365_v36, %v367_v35  ;;  %v372_v38 = vsel %vm370_vm4, %v367_v35, %v365_v36  ;;  %3136 = vmatpush1.msk.msra.mxu1 %vm416_vm0, %v408_v30  ;;  %3158 = vmatpush1.msk.msra.mxu0 %vm416_vm0, %v888_v28  ;;  %v3626_v30 = vrot.slane %v3170_v14, %v3464_v10  ;;  %v3147_v35 = vld [vmem:[%s3991_s2 + $0xc] sm:$0xf]  ;;  %v3171_v36 = vld [vmem:[%s3991_s2 + $0x20] sm:$0xf] }
  0x8d   : > { %v385_v40 = vmul.f32 %v3491_v22, %v372_v38  ;;  %v386_v41 = vmul.f32 %v3494_v23, %v371_v37  ;;  %3137 = vmatmul.mubr.msk.f32.vlgmr.msra.gmra.mrb[0].mxu1 %vm412_vm1, %v3134_v33  ;;  %3159 = vmatmul.mubr.msk.f32.vlgmr.msra.gmra.mrb[0].mxu0 %vm412_vm1, %v3156_v34 }
  0x8e   : > { %567 = vmatprep.mubr.f32.mxu1 %v3329_v0  ;;  %1071 = vmatprep.mubr.f32.mxu0 %v3329_v0 }
  0x8f   : > { %v977_v44 = vpop.permute.xlu1 %976  ;;  %3138 = vmatprep.subr.msk.mxu1 %vm416_vm0, %v386_v41  ;;  %v975_v45 = vpop.permute.xlu0 %974 }
  0x90   : > { %v979_v46 = vsel %vm978_vm5, %v975_v45, %v977_v44  ;;  %v980_v47 = vsel %vm978_vm5, %v977_v44, %v975_v45  ;;  %3139 = vmatpush1.msk.msra.mxu1 %vm416_vm0, %v385_v40 }
  0x91   : > { %v994_v48 = vmul.f32 %v3526_v39, %v979_v46  ;;  %v995_v49 = vmul.f32 %v3534_v42, %v980_v47 }
  0x93   : > { %v577_v55 = vpop.permute.xlu1 %576  ;;  %v575_v56 = vpop.permute.xlu0 %574  ;;  %3162 = vmatprep.subr.msk.mxu0 %vm416_vm0, %v995_v49 }
  0x94   : > { %v579_v57 = vsel %vm578_vm6, %v575_v56, %v577_v55  ;;  %v580_v58 = vsel %vm578_vm6, %v577_v55, %v575_v56  ;;  %3163 = vmatpush1.msk.msra.mxu0 %vm416_vm0, %v994_v48 }
  0x95   : > { %v594_v60 = vmul.f32 %v3551_v50, %v580_v58  ;;  %v595_v61 = vmul.f32 %v3554_v51, %v579_v57  ;;  %3140 = vmatmul.mubr.msk.f32.vlgmr.msra.gmra.mrb[0].mxu1 %vm412_vm1, %v387_v53  ;;  %3164 = vmatmul.mubr.msk.f32.vlgmr.msra.gmra.mrb[0].mxu0 %vm412_vm1, %v3161_v54 }
  0x96   : > { %671 = vmatprep.mubr.f32.mxu1 %v3329_v0  ;;  %1177 = vmatprep.mubr.f32.mxu0 %v3329_v0 }
  0x97   : > { %v1083_v3 = vpop.permute.xlu1 %1082  ;;  %3143 = vmatprep.subr.msk.mxu1 %vm416_vm0, %v595_v61  ;;  %v1081_v4 = vpop.permute.xlu0 %1080  ;;  %v3175_v61 = vld [vmem:[%s3993_s4 + $0x2] sm:$0x3] }
  0x98   : > { %v1085_v5 = vsel %vm1084_vm7, %v1081_v4, %v1083_v3  ;;  %v1086_v6 = vsel %vm1084_vm7, %v1083_v3, %v1081_v4  ;;  %3144 = vmatpush1.msk.msra.mxu1 %vm416_vm0, %v594_v60 }
  0x99   : > { %v1100_v7 = vmul.f32 %v3572_v59, %v1085_v5  ;;  %v1101_v11 = vmul.f32 %v3580_v62, %v1086_v6 }
  0x9b   : > { %v683_v21 = vpop.permute.xlu1 %682  ;;  %v681_v24 = vpop.permute.xlu0 %680  ;;  %3167 = vmatprep.subr.msk.mxu0 %vm416_vm0, %v1101_v11 }
  0x9c   : > { %v685_v25 = vsel %vm684_vm8, %v681_v24, %v683_v21  ;;  %v686_v26 = vsel %vm684_vm8, %v683_v21, %v681_v24  ;;  %3168 = vmatpush1.msk.msra.mxu0 %vm416_vm0, %v1100_v7  ;;  %v1310_v21 = vld [vmem:[%s3993_s4] sm:$0x3] }
  0x9d   : > { %v700_v28 = vmul.f32 %v3597_v12, %v686_v26  ;;  %v701_v29 = vmul.f32 %v3600_v13, %v685_v25  ;;  %3145 = vmatmul.mubr.msk.f32.vlgmr.msra.gmra.mrb[0].mxu1 %vm412_vm1, %v3142_v15  ;;  %3169 = vmatmul.mubr.msk.f32.vlgmr.msra.gmra.mrb[0].mxu0 %vm412_vm1, %v3166_v20 }
  0x9e   : > { %777 = vmatprep.mubr.f32.mxu1 %v3329_v0  ;;  %1283 = vmatprep.mubr.f32.mxu0 %v3329_v0 }
  0x9f   : > { %v1189_v31 = vpop.permute.xlu1 %1188  ;;  %3148 = vmatprep.subr.msk.mxu1 %vm416_vm0, %v701_v29  ;;  %v1187_v9 = vpop.permute.xlu0 %1186 }
  0xa0   : > { %v1191_v32 = vsel %vm1190_vm9, %v1187_v9, %v1189_v31  ;;  %v1192_v33 = vsel %vm1190_vm9, %v1189_v31, %v1187_v9  ;;  %3149 = vmatpush1.msk.msra.mxu1 %vm416_vm0, %v700_v28  ;;  %v3182_v9 = vld [vmem:[%s3993_s4 + $0x4] sm:$0x3] }
  0xa1   : > { %v1206_v34 = vmul.f32 %v3618_v27, %v1191_v32  ;;  %v1207_v10 = vmul.f32 %v3626_v30, %v1192_v33 }
  0xa3   : > { %3172 = vmatprep.subr.msk.mxu0 %vm416_vm0, %v1207_v10 }
  0xa4   : > { %3173 = vmatpush1.msk.msra.mxu0 %vm416_vm0, %v1206_v34 }
  0xa5   : > { %3150 = vmatmul.mubr.msk.f32.vlgmr.msra.gmra.mrb[0].mxu1 %vm412_vm1, %v3147_v35  ;;  %3174 = vmatmul.mubr.msk.f32.vlgmr.msra.gmra.mrb[0].mxu0 %vm412_vm1, %v3171_v36  ;;  %v3186_v35 = vld [vmem:[%s3993_s4 + $0x6] sm:$0x3] }
  0xa6   : > { %1394 = vmatprep.mubr.f32.mxu1 %v3329_v0  ;;  %2221 = vmatprep.mubr.f32.mxu0 %v3329_v0 }
  0xb0   : > { %v1296_v37 = vpop.permute.xlu0 %1295 }
 0x178   : > { %v779_v38 = vpop.f32.mrb[0].mxu1  ;;  %v1285_v40 = vpop.f32.mrb[0].mxu0 }
 0x179   : > { %v3252_v41 = vadd.f32 %v1285_v40, %v779_v38  ;;  %v781_v43 = vpop.f32.mrb[1].mxu1  ;;  %v1287_v44 = vpop.f32.mrb[1].mxu0 }
 0x17a   : > { %v3253_v45 = vadd.f32 %v1287_v44, %v781_v43  ;;  %v3190_v43 = vld [vmem:[%s3993_s4 + $0x8] sm:$0x3] }
 0x17b   : > { %v1298_v46 = vadd.f32 %v3252_v41, %v1296_v37 }
 0x17c   : > { %v1299_v47 = vadd.f32 %v3253_v45, %v1296_v37 }
 0x17d   : > { %v3650_v48 = vmax.f32 %v1298_v46, 0.0 }
 0x17e   : > { %v3656_v49 = vmax.f32 %v1299_v47, 0.0 }
 0x17f   : > { %1302 = vrot.lane.b32.xlu0 %v3650_v48, %s3332_s23  ;;  %1311 = vrot.lane.b32.xlu1 %v3650_v48, %s3331_s20 }
 0x183   : > { %1481 = vrot.lane.b32.xlu0 %v3650_v48, %s3334_s25  ;;  %1313 = vrot.lane.b32.xlu1 %v3656_v49, %s3331_s20 }
 0x187   : > { %1573 = vrot.lane.b32.xlu0 %v3650_v48, %s3337_s27  ;;  %1304 = vrot.lane.b32.xlu1 %v3656_v49, %s3332_s23 }
 0x18b   : > { %1749 = vrot.lane.b32.xlu0 %v3650_v48, %s3330_s19  ;;  %1483 = vrot.lane.b32.xlu1 %v3656_v49, %s3334_s25 }
 0x18f   : > { %1841 = vrot.lane.b32.xlu0 %v3650_v48, %s3333_s24  ;;  %1575 = vrot.lane.b32.xlu1 %v3656_v49, %s3337_s27 }
 0x193   : > { %1933 = vrot.lane.b32.xlu0 %v3650_v48, %s3335_s26  ;;  %1751 = vrot.lane.b32.xlu1 %v3656_v49, %s3330_s19 }
 0x197   : > { %2025 = vrot.lane.b32.xlu0 %v3650_v48, %s3338_s28  ;;  %1843 = vrot.lane.b32.xlu1 %v3656_v49, %s3333_s24 }
 0x19b   : > { %2120 = vperm.xlu0 %3318, %v2117_v52   ;;  %1935 = vrot.lane.b32.xlu1 %v3656_v49, %s3335_s26 }
 0x19f   : > { %2027 = vrot.lane.b32.xlu1 %v3656_v49, %s3338_s28 }
 0x1f1   : > { %v1312_v53 = vpop.permute.xlu1 %1311  ;;  %v1303_v54 = vpop.permute.xlu0 %1302 }
 0x1f5   : > { %v1314_v55 = vpop.permute.xlu1 %1313  ;;  %v1482_v5 = vpop.permute.xlu0 %1481 }
 0x1f6   : > { %v1315_v56 = vsel %vm392_vm3, %v1312_v53, %v1314_v55  ;;  %v1316_v57 = vsel %vm392_vm3, %v1314_v55, %v1312_v53 }
 0x1f7   : > { %v1317_v58 = vmul.f32 %v1316_v57, %v3484_v18  ;;  %v1318_v60 = vmul.f32 %v1315_v56, %v3487_v19 }
 0x1f9   : > { %3176 = vmatprep.subr.msk.mxu1 %vm416_vm0, %v1318_v60  ;;  %v1305_v63 = vpop.permute.xlu1 %1304  ;;  %v1574_v24 = vpop.permute.xlu0 %1573 }
 0x1fa   : > { %v1306_v3 = vsel %vm370_vm4, %v1303_v54, %v1305_v63  ;;  %v1307_v4 = vsel %vm370_vm4, %v1305_v63, %v1303_v54  ;;  %3177 = vmatpush1.msk.msra.mxu1 %vm416_vm0, %v1317_v58  ;;  %v3194_v54 = vld [vmem:[%s3993_s4 + $0xa] sm:$0x3]  ;;  %v3198_v63 = vld [vmem:[%s3993_s4 + $0xc] sm:$0x3] }
 0x1fb   : > { %v1308_v6 = vmul.f32 %v1307_v4, %v3491_v22  ;;  %v1309_v7 = vmul.f32 %v1306_v3, %v3494_v23  ;;  %3178 = vmatmul.mubr.msk.f32.vlgmr.msra.gmra.mrb[2].mxu1 %vm412_vm1, %v3175_v61 }
 0x1fc   : > { %1474 = vmatprep.mubr.f32.mxu1 %v3329_v0 }
 0x1fd   : > { %3179 = vmatprep.subr.msk.mxu1 %vm416_vm0, %v1309_v7  ;;  %v1484_v11 = vpop.permute.xlu1 %1483  ;;  %v1750_v34 = vpop.permute.xlu0 %1749 }
 0x1fe   : > { %v1485_v14 = vsel %vm578_vm6, %v1482_v5, %v1484_v11  ;;  %3180 = vmatpush1.msk.msra.mxu1 %vm416_vm0, %v1308_v6  ;;  %v1486_v15 = vsel %vm578_vm6, %v1484_v11, %v1482_v5  ;;  %v3202_v6 = vld [vmem:[%s3993_s4 + $0xe] sm:$0x3]  ;;  %v3206_v11 = vld [vmem:[%s3993_s4 + $0x10] sm:$0x3] }
 0x1ff   : > { %v1488_v20 = vmul.f32 %v1485_v14, %v3554_v51  ;;  %v1487_v26 = vmul.f32 %v1486_v15, %v3551_v50  ;;  %v2954_v14 = vld [vmem:[%s3997_s8] sm:$0xff] }
 0x201   : > { %3183 = vmatprep.subr.msk.mxu1 %vm416_vm0, %v1488_v20  ;;  %v1576_v25 = vpop.permute.xlu1 %1575  ;;  %v1842_v38 = vpop.permute.xlu0 %1841 }
 0x202   : > { %v1577_v28 = vsel %vm684_vm8, %v1574_v24, %v1576_v25  ;;  %v1578_v31 = vsel %vm684_vm8, %v1576_v25, %v1574_v24 }
 0x203   : > { %v1580_v29 = vmul.f32 %v1577_v28, %v3600_v13  ;;  %3181 = vmatmul.mubr.msk.f32.vlgmr.msra.gmra.mrb[2].mxu1 %vm412_vm1, %v1310_v21  ;;  %v1579_v32 = vmul.f32 %v1578_v31, %v3597_v12  ;;  %v2944_v31 = vld [vmem:[%s3996_s7] sm:$0x3] }
 0x204   : > { %3184 = vmatpush1.msk.msra.mxu1 %vm416_vm0, %v1487_v26  ;;  %1564 = vmatprep.mubr.f32.mxu1 %v3329_v0 }
 0x205   : > { %3187 = vmatprep.subr.msk.mxu1 %vm416_vm0, %v1580_v29  ;;  %v1752_v33 = vpop.permute.xlu1 %1751  ;;  %v1934_v47 = vpop.permute.xlu0 %1933  ;;  %v2955_v29 = vld [vmem:[%s3998_s9] sm:$0xff] }
 0x206   : > { %v1754_v10 = vsel %vm872_vm2, %v1752_v33, %v1750_v34  ;;  %v1753_v40 = vsel %vm872_vm2, %v1750_v34, %v1752_v33 }
 0x207   : > { %v1756_v36 = vmul.f32 %v1754_v10, %v3481_v17  ;;  %v1755_v44 = vmul.f32 %v1753_v40, %v3478_v16 }
 0x209   : > { %v1844_v37 = vpop.permute.xlu1 %1843  ;;  %v2026_v58 = vpop.permute.xlu0 %2025 }
 0x20a   : > { %v1846_v41 = vsel %vm978_vm5, %v1844_v37, %v1842_v38  ;;  %v1845_v52 = vsel %vm978_vm5, %v1842_v38, %v1844_v37  ;;  %v3210_v37 = vld [vmem:[%s3995_s6 + $0x2] sm:$0x3] }
 0x20b   : > { %3185 = vmatmul.mubr.msk.f32.vlgmr.msra.gmra.mrb[2].mxu1 %vm412_vm1, %v3182_v9  ;;  %v1848_v45 = vmul.f32 %v1846_v41, %v3534_v42  ;;  %v1847_v55 = vmul.f32 %v1845_v52, %v3526_v39 }
 0x20c   : > { %3188 = vmatpush1.msk.msra.mxu1 %vm416_vm0, %v1579_v32  ;;  %1656 = vmatprep.mubr.f32.mxu1 %v3329_v0 }
 0x20d   : > { %3191 = vmatprep.subr.msk.mxu1 %vm416_vm0, %v3656_v49  ;;  %v1936_v46 = vpop.permute.xlu1 %1935 }
 0x20e   : > { %v1938_v53 = vsel %vm1084_vm7, %v1936_v46, %v1934_v47  ;;  %v1937_v60 = vsel %vm1084_vm7, %v1934_v47, %v1936_v46 }
 0x20f   : > { %v1940_v56 = vmul.f32 %v1938_v53, %v3580_v62  ;;  %v1939_v3 = vmul.f32 %v1937_v60, %v3572_v59  ;;  %v3221_v60 = vld [vmem:[%s3995_s6 + $0x6] sm:$0x3] }
 0x211   : > { %v2028_v57 = vpop.permute.xlu1 %2027 }
 0x212   : > { %v2030_v61 = vsel %vm1190_vm9, %v2028_v57, %v2026_v58  ;;  %v2029_v5 = vsel %vm1190_vm9, %v2026_v58, %v2028_v57 }
 0x213   : > { %3189 = vmatmul.mubr.msk.f32.vlgmr.msra.gmra.mrb[2].mxu1 %vm412_vm1, %v3186_v35  ;;  %v2032_v4 = vmul.f32 %v2030_v61, %v3626_v30  ;;  %v2031_v7 = vmul.f32 %v2029_v5, %v3618_v27 }
 0x214   : > { %3192 = vmatpush1.msk.msra.mxu1 %vm416_vm0, %v3650_v48  ;;  %1740 = vmatprep.mubr.f32.mxu1 %v3329_v0 }
 0x215   : > { %3195 = vmatprep.subr.msk.mxu1 %vm416_vm0, %v1756_v36 }
 0x21a   : > { %v2121_v15 = vpop.permute.xlu0 %2120 }
 0x21b   : > { %3193 = vmatmul.mubr.msk.f32.vlgmr.msra.gmra.mrb[2].mxu1 %vm412_vm1, %v3190_v43 }
 0x21c   : > { %3196 = vmatpush1.msk.msra.mxu1 %vm416_vm0, %v1755_v44  ;;  %1832 = vmatprep.mubr.f32.mxu1 %v3329_v0 }
 0x21d   : > { %3199 = vmatprep.subr.msk.mxu1 %vm416_vm0, %v1848_v45 }
 0x223   : > { %3197 = vmatmul.mubr.msk.f32.vlgmr.msra.gmra.mrb[2].mxu1 %vm412_vm1, %v3194_v54 }
 0x224   : > { %3200 = vmatpush1.msk.msra.mxu1 %vm416_vm0, %v1847_v55  ;;  %1924 = vmatprep.mubr.f32.mxu1 %v3329_v0 }
 0x225   : > { %3203 = vmatprep.subr.msk.mxu1 %vm416_vm0, %v1940_v56 }
 0x22b   : > { %3201 = vmatmul.mubr.msk.f32.vlgmr.msra.gmra.mrb[2].mxu1 %vm412_vm1, %v3198_v63 }
 0x22c   : > { %3204 = vmatpush1.msk.msra.mxu1 %vm416_vm0, %v1939_v3  ;;  %2016 = vmatprep.mubr.f32.mxu1 %v3329_v0 }
 0x22d   : > { %3207 = vmatprep.subr.msk.mxu1 %vm416_vm0, %v2032_v4 }
 0x233   : > { %3205 = vmatmul.mubr.msk.f32.vlgmr.msra.gmra.mrb[2].mxu1 %vm412_vm1, %v3202_v6 }
 0x234   : > { %3208 = vmatpush1.msk.msra.mxu1 %vm416_vm0, %v2031_v7  ;;  %2108 = vmatprep.mubr.f32.mxu1 %v3329_v0 }
 0x235   : > { %3245 = vmatprep.subr.msk.mxu1 %vm416_vm0, %v3418_v2 }
 0x23b   : > { %3209 = vmatmul.mubr.msk.f32.vlgmr.msra.gmra.mrb[2].mxu1 %vm412_vm1, %v3206_v11 }
 0x23c   : > { %3246 = vmatpush1.msk.msra.mxu1 %vm416_vm0, %v3410_v1  ;;  %3028 = vmatprep.mubr.f32.mxu1 %v3329_v0 }
 0x23f   : > { %3247 = vmatmul.mubr.msk.f32.vlgmr.msra.gmra.mrb[4].mxu1 %vm412_vm1, %v2954_v14 }
 0x30e   : > { %v2110_v20 = vpop.f32.mrb[2].mxu1 }
 0x30f   : > { %v2123_v2 = vadd.f32 %v2121_v15, %v2110_v20  ;;  %v2112_v21 = vpop.f32.mrb[3].mxu1 }
 0x310   : > { %v2124_v24 = vadd.f32 %v2121_v15, %v2112_v21 }
 0x311   : > { %v3810_v25 = vmax.f32 %v2123_v2, 0.0 }
 0x312   : > { %v3812_v26 = vmax.f32 %v2124_v24, 0.0  ;;  %v3842_v1 = vpop.f32.mrb[4].mxu1 }
 0x313   : > { %2136 = vrot.lane.b32.xlu1 %v3810_v25, %s3331_s20  ;;  %v3846_v28 = vpop.f32.mrb[5].mxu1 }
 0x314   : > { %2138 = vrot.lane.b32.xlu0 %v3812_v26, %s3331_s20  ;;  %s3945_s20 = scalar_lea.vmem %s3999_s10, %s3251_s15 }
 0x317   : > { %2127 = vrot.lane.b32.xlu1 %v3810_v25, %s3332_s23 }
 0x318   : > { %2129 = vrot.lane.b32.xlu0 %v3812_v26, %s3332_s23 }
 0x31b   : > { %2308 = vrot.lane.b32.xlu1 %v3810_v25, %s3334_s25 }
 0x31c   : > { %2310 = vrot.lane.b32.xlu0 %v3812_v26, %s3334_s25 }
 0x31f   : > { %2400 = vrot.lane.b32.xlu1 %v3810_v25, %s3337_s27 }
 0x320   : > { %2402 = vrot.lane.b32.xlu0 %v3812_v26, %s3337_s27 }
 0x323   : > { %2576 = vrot.lane.b32.xlu1 %v3810_v25, %s3330_s19 }
 0x324   : > { %2578 = vrot.lane.b32.xlu0 %v3812_v26, %s3330_s19 }
 0x327   : > { %2668 = vrot.lane.b32.xlu1 %v3810_v25, %s3333_s24 }
 0x328   : > { %2670 = vrot.lane.b32.xlu0 %v3812_v26, %s3333_s24 }
 0x32b   : > { %2760 = vrot.lane.b32.xlu1 %v3810_v25, %s3335_s26 }
 0x32c   : > { %2762 = vrot.lane.b32.xlu0 %v3812_v26, %s3335_s26 }
 0x32f   : > { %2852 = vrot.lane.b32.xlu1 %v3810_v25, %s3338_s28 }
 0x330   : > { %2854 = vrot.lane.b32.xlu0 %v3812_v26, %s3338_s28 }
 0x333   : > { %2947 = vperm.xlu1 %3319, %v2944_v31  }
 0x334   : > { %2958 = vperm.xlu0 %3318, %v2955_v29  }
 0x385   : > { %v2137_v9 = vpop.permute.xlu1 %2136 }
 0x386   : > { %v2139_v32 = vpop.permute.xlu0 %2138 }
 0x387   : > { %v2140_v33 = vsel %vm392_vm3, %v2137_v9, %v2139_v32  ;;  %v2141_v34 = vsel %vm392_vm3, %v2139_v32, %v2137_v9 }
 0x388   : > { %v2142_v10 = vmul.f32 %v2141_v34, %v3484_v18  ;;  %v2143_v35 = vmul.f32 %v2140_v33, %v3487_v19 }
 0x389   : > { %v2128_v36 = vpop.permute.xlu1 %2127 }
 0x38a   : > { %3211 = vmatprep.subr.msk.mxu0 %vm2150_vm10, %v2143_v35  ;;  %v2130_v38 = vpop.permute.xlu0 %2129 }
 0x38b   : > { %v2131_v40 = vsel %vm370_vm4, %v2128_v36, %v2130_v38  ;;  %v2132_v41 = vsel %vm370_vm4, %v2130_v38, %v2128_v36  ;;  %3212 = vmatpush1.msk.msra.mxu0 %vm2150_vm10, %v2142_v10 }
 0x38c   : > { %v2133_v18 = vmul.f32 %v2132_v41, %v3491_v22  ;;  %v2134_v19 = vmul.f32 %v2131_v40, %v3494_v23  ;;  %3213 = vmatmul.mubr.msk.f32.vlgmr.msra.gmra.mrb[2].mxu0 %vm2146_vm11, %v3210_v37  ;;  %v2135_v23 = vld [vmem:[%s3995_s6] sm:$0x3] }
 0x38d   : > { %v2309_v43 = vpop.permute.xlu1 %2308  ;;  %2301 = vmatprep.mubr.f32.mxu0 %v3329_v0 }
 0x38e   : > { %3214 = vmatprep.subr.msk.mxu0 %vm2150_vm10, %v2134_v19  ;;  %v2311_v44 = vpop.permute.xlu0 %2310 }
 0x38f   : > { %v2312_v45 = vsel %vm578_vm6, %v2309_v43, %v2311_v44  ;;  %3215 = vmatpush1.msk.msra.mxu0 %vm2150_vm10, %v2133_v18  ;;  %v2313_v46 = vsel %vm578_vm6, %v2311_v44, %v2309_v43 }
 0x390   : > { %v2315_v22 = vmul.f32 %v2312_v45, %v3554_v51  ;;  %v2314_v53 = vmul.f32 %v2313_v46, %v3551_v50  ;;  %v3217_v50 = vld [vmem:[%s3995_s6 + $0x4] sm:$0x3] }
 0x391   : > { %v2401_v47 = vpop.permute.xlu1 %2400 }
 0x392   : > { %3218 = vmatprep.subr.msk.mxu0 %vm2150_vm10, %v2315_v22  ;;  %v2403_v52 = vpop.permute.xlu0 %2402 }
 0x393   : > { %v2404_v54 = vsel %vm684_vm8, %v2401_v47, %v2403_v52  ;;  %v2405_v51 = vsel %vm684_vm8, %v2403_v52, %v2401_v47 }
 0x394   : > { %v2407_v55 = vmul.f32 %v2404_v54, %v3600_v13  ;;  %3216 = vmatmul.mubr.msk.f32.vlgmr.msra.gmra.mrb[2].mxu0 %vm2146_vm11, %v2135_v23  ;;  %v2406_v56 = vmul.f32 %v2405_v51, %v3597_v12 }
 0x395   : > { %3219 = vmatpush1.msk.msra.mxu0 %vm2150_vm10, %v2314_v53  ;;  %2391 = vmatprep.mubr.f32.mxu0 %v3329_v0  ;;  %v2577_v57 = vpop.permute.xlu1 %2576 }
 0x396   : > { %3222 = vmatprep.subr.msk.mxu0 %vm2150_vm10, %v2407_v55  ;;  %v2579_v13 = vpop.permute.xlu0 %2578 }
 0x397   : > { %v2581_v58 = vsel %vm872_vm2, %v2579_v13, %v2577_v57  ;;  %v2580_v3 = vsel %vm872_vm2, %v2577_v57, %v2579_v13 }
 0x398   : > { %v2583_v12 = vmul.f32 %v2581_v58, %v3481_v17  ;;  %v3225_v17 = vld [vmem:[%s3995_s6 + $0x8] sm:$0x3]  ;;  %v2582_v6 = vmul.f32 %v2580_v3, %v3478_v16  ;;  %v3229_v16 = vld [vmem:[%s3995_s6 + $0xa] sm:$0x3] }
 0x399   : > { %v2669_v63 = vpop.permute.xlu1 %2668 }
 0x39a   : > { %v2671_v61 = vpop.permute.xlu0 %2670 }
 0x39b   : > { %v2673_v4 = vsel %vm978_vm5, %v2671_v61, %v2669_v63  ;;  %v2672_v15 = vsel %vm978_vm5, %v2669_v63, %v2671_v61 }
 0x39c   : > { %3220 = vmatmul.mubr.msk.f32.vlgmr.msra.gmra.mrb[2].mxu0 %vm2146_vm11, %v3217_v50  ;;  %v2675_v7 = vmul.f32 %v2673_v4, %v3534_v42  ;;  %v2674_v42 = vmul.f32 %v2672_v15, %v3526_v39 }
 0x39d   : > { %3223 = vmatpush1.msk.msra.mxu0 %vm2150_vm10, %v2406_v56  ;;  %2483 = vmatprep.mubr.f32.mxu0 %v3329_v0  ;;  %v2761_v11 = vpop.permute.xlu1 %2760 }
 0x39e   : > { %3226 = vmatprep.subr.msk.mxu0 %vm2150_vm10, %v3812_v26  ;;  %v2763_v5 = vpop.permute.xlu0 %2762 }
 0x39f   : > { %v2765_v20 = vsel %vm1084_vm7, %v2763_v5, %v2761_v11  ;;  %v2764_v9 = vsel %vm1084_vm7, %v2761_v11, %v2763_v5 }
 0x3a0   : > { %v2767_v21 = vmul.f32 %v2765_v20, %v3580_v62  ;;  %v2766_v35 = vmul.f32 %v2764_v9, %v3572_v59 }
 0x3a1   : > { %v2853_v39 = vpop.permute.xlu1 %2852 }
 0x3a2   : > { %v2855_v14 = vpop.permute.xlu0 %2854 }
 0x3a4   : > { %3224 = vmatmul.mubr.msk.f32.vlgmr.msra.gmra.mrb[2].mxu0 %vm2146_vm11, %v3221_v60 }
 0x3a5   : > { %3227 = vmatpush1.msk.msra.mxu0 %vm2150_vm10, %v3810_v25  ;;  %2567 = vmatprep.mubr.f32.mxu0 %v3329_v0 }
 0x3a6   : > { %3230 = vmatprep.subr.msk.mxu0 %vm2150_vm10, %v2583_v12 }
 0x3ac   : > { %3228 = vmatmul.mubr.msk.f32.vlgmr.msra.gmra.mrb[2].mxu0 %vm2146_vm11, %v3225_v17 }
 0x3ad   : > { %3231 = vmatpush1.msk.msra.mxu0 %vm2150_vm10, %v2582_v6  ;;  %2659 = vmatprep.mubr.f32.mxu0 %v3329_v0 }
 0x3ae   : > { %3234 = vmatprep.subr.msk.mxu0 %vm2150_vm10, %v2675_v7 }
 0x3b2   : > { %v2948_v8 = vpop.permute.xlu1 %2947 }
 0x3b3   : > { %v2959_v2 = vpop.permute.xlu0 %2958 }
 0x3b4   : > { %v3031_v24 = vadd.f32 %v3842_v1, %v2959_v2  ;;  %v3033_v29 = vadd.f32 %v3846_v28, %v2959_v2  ;;  %3232 = vmatmul.mubr.msk.f32.vlgmr.msra.gmra.mrb[2].mxu0 %vm2146_vm11, %v3229_v16 }
 0x3b5   : > { %3235 = vmatpush1.msk.msra.mxu0 %vm2150_vm10, %v2674_v42  ;;  %2751 = vmatprep.mubr.f32.mxu0 %v3329_v0 }
 0x3b6   : > { %v3035_v62 = vadd.f32 %v3031_v24, %v3650_v48  ;;  %v3036_v1 = vadd.f32 %v3033_v29, %v3656_v49  ;;  %v3041_v28 = vrot.slane %v3031_v24, 4  ;;  %v3042_v31 = vrot.slane %v3033_v29, 4  ;;  %3238 = vmatprep.subr.msk.mxu0 %vm2150_vm10, %v2767_v21  ;;  %v3233_v49 = vld [vmem:[%s3995_s6 + $0xc] sm:$0x3] }
 0x3b7   : > { %v2857_v48 = vsel %vm1190_vm9, %v2855_v14, %v2853_v39  ;;  %v3055_v18 = vrot.slane %v3031_v24, 6  ;;  %v3056_v43 = vrot.slane %v3033_v29, 6 }
 0x3b8   : > { %3037 = vst [vmem:[%s3945_s20] sm:$0xf] %v3035_v62  ;;  %3038 = vst [vmem:[%s3945_s20 + $0x8] sm:$0xf] %v3036_v1  ;;  %v3045_v32 = vadd.f32 %v3041_v28, %v3810_v25  ;;  %v3046_v33 = vadd.f32 %v3042_v31, %v3812_v26  ;;  %v2859_v36 = vmul.f32 %v2857_v48, %v3626_v30  ;;  %v3237_v26 = vld [vmem:[%s3995_s6 + $0xe] sm:$0x3] }
 0x3b9   : > { %v2856_v25 = vsel %vm1190_vm9, %v2853_v39, %v2855_v14  ;;  %v3241_v30 = vld [vmem:[%s3995_s6 + $0x10] sm:$0x3] }
 0x3ba   : > { %v3049_v34 = vrot.slane %v3045_v32, 4  ;;  %v3050_v10 = vrot.slane %v3046_v33, 4  ;;  %v2858_v59 = vmul.f32 %v2856_v25, %v3618_v27 }
 0x3bc   : > { %3053 = vst [vmem:[%s3945_s20] sm:$0x30] %v3049_v34  ;;  %3054 = vst [vmem:[%s3945_s20 + $0x8] sm:$0x30] %v3050_v10  ;;  %3236 = vmatmul.mubr.msk.f32.vlgmr.msra.gmra.mrb[2].mxu0 %vm2146_vm11, %v3233_v49 }
 0x3bd   : > { %3239 = vmatpush1.msk.msra.mxu0 %vm2150_vm10, %v2766_v35  ;;  %2843 = vmatprep.mubr.f32.mxu0 %v3329_v0 }
 0x3be   : > { %3242 = vmatprep.subr.msk.mxu0 %vm2150_vm10, %v2859_v36 }
 0x3c4   : > { %3240 = vmatmul.mubr.msk.f32.vlgmr.msra.gmra.mrb[2].mxu0 %vm2146_vm11, %v3237_v26 }
 0x3c5   : > { %3243 = vmatpush1.msk.msra.mxu0 %vm2150_vm10, %v2858_v59  ;;  %2935 = vmatprep.mubr.f32.mxu0 %v3329_v0 }
 0x3cc   : > { %3244 = vmatmul.mubr.msk.f32.vlgmr.msra.gmra.mrb[2].mxu0 %vm2146_vm11, %v3241_v30 }
 0x49f   : > { %v2937_v37 = vpop.f32.mrb[2].mxu0 }
 0x4a0   : > { %v2950_v38 = vadd.f32 %v2948_v8, %v2937_v37  ;;  %v2939_v40 = vpop.f32.mrb[3].mxu0 }
 0x4a1   : > { %v2951_v41 = vadd.f32 %v2948_v8, %v2939_v40 }
 0x4a2   : > { %v2952_v27 = vmax.f32 %v2950_v38, 0.0 }
 0x4a3   : > { %v2953_v19 = vmax.f32 %v2951_v41, 0.0 }
 0x4a4   : > { %v3059_v44 = vadd.f32 %v3055_v18, %v2952_v27 }
 0x4a5   : > { %v3060_v45 = vadd.f32 %v3056_v43, %v2953_v19 }
 0x4a6   : > { %v3063_v0 = vrot.slane %v3059_v44, 2 }
 0x4a7   : > { %v3064_v46 = vrot.slane %v3060_v45, 2 }
 0x4a8   : > { %3067 = vst [vmem:[%s3945_s20] sm:$0xc0] %v3063_v0 }
 0x4a9   : > { %3068 = vst [vmem:[%s3945_s20 + $0x8] sm:$0xc0] %v3064_v46 }
 0x4aa PF: > { %s20_s13 = sadd.s32 1, %s3327_s13  }
 0x4ab   : > { %p17_p4 = scmp.ge.s32.totalorder %s20_s13, 4  }
 0x4ad   :  { %19 = sbr.rel (!%p17_p4) target bundleno = 1 (0x1), region = 121 }

</bundles_post_ra>
